<compile_context>
chip_gen: v7x
topology: tpu7x:2x2x1
jax: 0.10.0
libtpu: 0.0.40
codegen_flags: <defaults>
</compile_context>

<pallas_src>
import jax
import jax.numpy as jnp
from jax.experimental import pallas as pl
from jax.experimental.pallas import tpu as pltpu


def _fold_bn(gamma, beta, mean, var, eps=1e-5):
    scale = gamma / jnp.sqrt(var + eps)
    shift = beta - mean * scale
    return scale, shift


def _toeplitz_layer_weights(w_hwio, scale, shift, width):
    """Fold BN scale into the conv weights and expand into ONE block-Toeplitz
    matrix (KH*W*Cin, W*Cout) in bf16 (kh folded into the contraction dim),
    plus the BN shift tiled to (1, W*Cout).  Horizontal 'same' padding is folded
    into the Toeplitz structure (structural zeros)."""
    KH, KW, Cin, Cout = w_hwio.shape
    pad = (KW - 1) // 2
    wf = w_hwio * scale[None, None, None, :]                    # (KH,KW,Cin,Cout) f32
    wq = jnp.arange(width)[:, None]                             # input column
    wo = jnp.arange(width)[None, :]                             # output column
    kw_idx = wq + pad - wo                                      # (W, W)
    valid = (kw_idx >= 0) & (kw_idx < KW)
    g = wf[:, jnp.clip(kw_idx, 0, KW - 1), :, :]                # (KH, Win, Wout, Cin, Cout)
    g = jnp.where(valid[None, :, :, None, None], g, 0.0)
    t = jnp.transpose(g, (0, 1, 3, 2, 4))                       # (KH, Win, Cin, Wout, Cout)
    t = t.reshape(KH * width * Cin, width * Cout).astype(jnp.bfloat16)
    s = jnp.tile(shift.astype(jnp.float32), width).reshape(1, width * Cout)
    return t, s


def region_base_block(x, params, *, batch_block=None):
    """Fused RegionBaseBlock forward. x: (N, H, W, Cin) NHWC, f32."""
    # TODO(synk): only stride=1 (the configuration forward() uses by default) is
    # implemented; strided convs would change the Toeplitz construction.
    # TODO(synk): for large W/C, tile W into lane blocks (block-banded Toeplitz
    # with a horizontal halo) so weight VMEM stays O(W), and single-buffer the
    # grid-invariant weights (pipeline_mode=pl.Buffered(1)) — both matter for
    # v7x's 64 MiB VMEM; at these sizes everything fits easily.
    N, H, W, C0 = x.shape
    c_out = [int(p["w"].shape[-1]) for p in params]
    c_in = [C0] + c_out[:-1]
    khs = [int(p["w"].shape[0]) for p in params]
    pads = [(k - 1) // 2 for k in khs]
    C4 = c_out[-1]

    layers = [_toeplitz_layer_weights(p["w"], p["scale"], p["shift"], W)
              for p in params]

    wcin = [W * c for c in c_in]       # input lane width per layer
    wcout = [W * c for c in c_out]     # output lane width per layer
    hps = [H + 2 * p for p in pads]    # per-image padded row count per layer
    ks = [k * wc for k, wc in zip(khs, wcin)]   # matmul K per layer

    # ---- batch blocking: grow matmul M = B_blk * H ---------------------------
    if batch_block is None:
        target = max(1, pl.cdiv(256, H))        # aim for M >= 256 rows
        cap = max(1, N // 2) if N >= 2 else 1   # keep >=2 grid steps (v7x megacore)
        B_blk = 1
        for d in range(1, N + 1):
            if N % d == 0 and d <= min(target, cap):
                B_blk = d
    else:
        B_blk = int(batch_block)
    assert N % B_blk == 0, (N, B_blk)
    G = N // B_blk
    M = B_blk * H

    def kernel(x_ref, t1, s1, t2, s2, t3, s3, t4, s4, o_ref, xp, col):
        """x_ref: (B_blk, H, W*C0) f32, o_ref: (B_blk, H, W*C4) f32.
        xp  : shared bf16 padded-activation scratch, per-image vertical halos.
        col : shared bf16 im2col-over-kh row buffer (M, max K)."""
        t_refs = (t1, t2, t3, t4)
        s_refs = (s1, s2, s3, s4)

        def write_padded(layer, b, rows):
            # Place the interior rows (casting once to bf16) and zero ONLY the
            # 2*pad halo rows for this image; lanes beyond wcin are never read.
            pad, hp, wci = pads[layer], hps[layer], wcin[layer]
            base = b * hp
            xp[pl.ds(base, pad), pl.ds(0, wci)] = jnp.zeros((pad, wci), jnp.bfloat16)
            xp[pl.ds(base + pad, H), pl.ds(0, wci)] = rows.astype(jnp.bfloat16)
            xp[pl.ds(base + pad + H, pad), pl.ds(0, wci)] = jnp.zeros(
                (pad, wci), jnp.bfloat16)

        # Stage the input block into the layer-0 padded scratch (bf16 cast once).
        for b in range(B_blk):
            write_padded(0, b, x_ref[b])

        for n in range(4):
            kh_n, hp = khs[n], hps[n]
            wci, wco, K = wcin[n], wcout[n], ks[n]
            # im2col over kh only: col[:, kh*wci:(kh+1)*wci] = shifted row band.
            for b in range(B_blk):
                for kh in range(kh_n):              # static unroll (<= 9 * B_blk)
                    col[pl.ds(b * H, H), pl.ds(kh * wci, wci)] = \
                        xp[pl.ds(b * hp + kh, H), pl.ds(0, wci)]
            # One MXU matmul per layer: (M, KH*W*Cin) x (KH*W*Cin, W*Cout).
            acc = jnp.dot(col[pl.ds(0, M), pl.ds(0, K)], t_refs[n][...],
                          preferred_element_type=jnp.float32)
            act = jnp.maximum(acc + s_refs[n][...], 0.0)      # BN shift + ReLU, f32
            for b in range(B_blk):
                rows = act[b * H:(b + 1) * H, :]
                if n < 3:
                    write_padded(n + 1, b, rows)   # fused epilogue into scratch store
                else:
                    o_ref[b] = rows.astype(o_ref.dtype)

    x_flat = x.reshape(N, H, W * C0)       # lane-dense input rows (free reshape)

    in_specs = [pl.BlockSpec((B_blk, H, W * C0), lambda g: (g, 0, 0))]
    weight_args = []
    for t, s in layers:
        in_specs.append(pl.BlockSpec(t.shape, lambda g: (0, 0)))
        in_specs.append(pl.BlockSpec(s.shape, lambda g: (0, 0)))
        weight_args += [t, s]

    flops = sum(2 * N * H * k * wo for k, wo in zip(ks, wcout))
    bytes_accessed = (x_flat.size * x_flat.dtype.itemsize
                      + N * H * W * C4 * x.dtype.itemsize
                      + sum(t.size * 2 + s.size * 4 for t, s in layers))

    out_flat = pl.pallas_call(
        kernel,
        out_shape=jax.ShapeDtypeStruct((N, H, W * C4), x.dtype),
        grid_spec=pltpu.PrefetchScalarGridSpec(
            num_scalar_prefetch=0,
            grid=(G,),
            in_specs=in_specs,
            out_specs=pl.BlockSpec((B_blk, H, W * C4), lambda g: (g, 0, 0)),
            scratch_shapes=[
                # shared bf16 padded-activation scratch (all 4 layers reuse it)
                pltpu.VMEM((B_blk * max(hps), max(wcin)), jnp.bfloat16),
                # shared bf16 im2col-over-kh row buffer
                pltpu.VMEM((M, max(ks)), jnp.bfloat16),
            ],
        ),
        compiler_params=pltpu.CompilerParams(
            dimension_semantics=("parallel",),
            vmem_limit_bytes=32 * 1024 * 1024),
        cost_estimate=pl.CostEstimate(
            flops=flops, transcendentals=0, bytes_accessed=bytes_accessed),
    )(x_flat, *weight_args)

    return out_flat.reshape(N, H, W, C4)


def init_region_base_block_params(key, in_planes, planes):
    """Deterministic synthetic parameters matching RegionBaseBlock.__init__."""
    half = planes // 2
    conv_shapes = [
        (9, 9, in_planes, half),   # conv1, pad 4
        (7, 7, half, half),        # conv2, pad 3
        (5, 5, half, planes),      # conv3, pad 2
        (3, 3, planes, planes),    # conv4, pad 1
    ]
    params = []
    for shp in conv_shapes:
        kh, kw, cin, cout = shp
        key, kw_, kg, kb, km, kv = jax.random.split(key, 6)
        fan_in = kh * kw * cin
        w = jax.random.normal(kw_, shp, jnp.float32) * jnp.sqrt(2.0 / fan_in)
        gamma = 1.0 + 0.1 * jax.random.normal(kg, (cout,), jnp.float32)
        beta = 0.1 * jax.random.normal(kb, (cout,), jnp.float32)
        mean = 0.1 * jax.random.normal(km, (cout,), jnp.float32)
        var = 0.5 + jnp.abs(jax.random.normal(kv, (cout,), jnp.float32))
        scale, shift = _fold_bn(gamma, beta, mean, var)
        params.append({"w": w, "scale": scale, "shift": shift})
    return params


def _reference(x, params):
    """Plain-JAX reference mirroring the kernel's matmul precision
    (bf16 operands, f32 accumulation / epilogue)."""
    out = x
    for p in params:
        k = p["w"].shape[0]
        pad = (k - 1) // 2
        w = (p["w"] * p["scale"][None, None, None, :]).astype(jnp.bfloat16)
        y = jax.lax.conv_general_dilated(
            out.astype(jnp.bfloat16), w,
            window_strides=(1, 1),
            padding=[(pad, pad), (pad, pad)],
            dimension_numbers=("NHWC", "HWIO", "NHWC"),
            preferred_element_type=jnp.float32,
        )
        out = jnp.maximum(y + p["shift"], 0.0)
    return out


if __name__ == "__main__":
    key = jax.random.PRNGKey(0)
    k_x, k_p = jax.random.split(key)

    N, H, W = 4, 16, 16          # N=4 -> B_blk=2, grid=(2,) exercises batch blocking
    in_planes, planes = 4, 8

    x = jax.random.normal(k_x, (N, H, W, in_planes), jnp.float32)
    params = init_region_base_block_params(k_p, in_planes, planes)

    out = jax.block_until_ready(region_base_block(x, params))
    ref = _reference(x, params)

    assert out.shape == (N, H, W, planes), out.shape
    max_err = float(jnp.max(jnp.abs(out - ref)))
    assert jnp.allclose(out, ref, rtol=2e-2, atol=2e-2), max_err

    print("KERNEL_OK")
</pallas_src>

<mosaic_0001>
module attributes {stable_mosaic.version = 11 : i64} {
  func.func @kernel(%arg0: i32, %arg1: memref<2x16x64xf32, #tpu.memory_space<vmem>>, %arg2: memref<576x64xbf16, #tpu.memory_space<vmem>>, %arg3: memref<1x64xf32, #tpu.memory_space<vmem>>, %arg4: memref<448x64xbf16, #tpu.memory_space<vmem>>, %arg5: memref<1x64xf32, #tpu.memory_space<vmem>>, %arg6: memref<320x128xbf16, #tpu.memory_space<vmem>>, %arg7: memref<1x128xf32, #tpu.memory_space<vmem>>, %arg8: memref<384x128xbf16, #tpu.memory_space<vmem>>, %arg9: memref<1x128xf32, #tpu.memory_space<vmem>>, %arg10: memref<2x16x128xf32, #tpu.memory_space<vmem>>, %arg11: memref<48x128xbf16, #tpu.memory_space<vmem>>, %arg12: memref<32x576xbf16, #tpu.memory_space<vmem>>) attributes {dimension_semantics = [#tpu.dimension_semantics<parallel>], iteration_bounds = array<i64: 2>, scalar_prefetch = 0 : i64, scratch_operands = 2 : i64, tpu.core_type = #tpu.core_type<tc>, window_params = [{transform_indices = @transform_0, window_bounds = array<i64: 2, 16, 64>}, {pipeline_mode = #tpu.pipeline_mode<synchronous>, transform_indices = @transform_1, window_bounds = array<i64: 576, 64>}, {pipeline_mode = #tpu.pipeline_mode<synchronous>, transform_indices = @transform_2, window_bounds = array<i64: 1, 64>}, {pipeline_mode = #tpu.pipeline_mode<synchronous>, transform_indices = @transform_3, window_bounds = array<i64: 448, 64>}, {pipeline_mode = #tpu.pipeline_mode<synchronous>, transform_indices = @transform_4, window_bounds = array<i64: 1, 64>}, {pipeline_mode = #tpu.pipeline_mode<synchronous>, transform_indices = @transform_5, window_bounds = array<i64: 320, 128>}, {pipeline_mode = #tpu.pipeline_mode<synchronous>, transform_indices = @transform_6, window_bounds = array<i64: 1, 128>}, {pipeline_mode = #tpu.pipeline_mode<synchronous>, transform_indices = @transform_7, window_bounds = array<i64: 384, 128>}, {pipeline_mode = #tpu.pipeline_mode<synchronous>, transform_indices = @transform_8, window_bounds = array<i64: 1, 128>}, {transform_indices = @transform_9, window_bounds = array<i64: 2, 16, 128>}]} {
    %c0 = arith.constant 0 : index
    %c0_0 = arith.constant 0 : index
    %c0_1 = arith.constant 0 : index
    %0 = vector.load %arg1[%c0, %c0_0, %c0_1] : memref<2x16x64xf32, #tpu.memory_space<vmem>>, vector<1x16x64xf32>
    %1 = vector.shape_cast %0 : vector<1x16x64xf32> to vector<16x64xf32>
    %cst = arith.constant 0.000000e+00 : bf16
    %2 = vector.broadcast %cst : bf16 to vector<4x64xbf16>
    %c0_2 = arith.constant 0 : index
    %c0_3 = arith.constant 0 : index
    %3 = vector.load %arg11[%c0_2, %c0_3] : memref<48x128xbf16, #tpu.memory_space<vmem>>, vector<4x64xbf16>
    tpu.vector_store %arg11[%c0_2, %c0_3], %2 {strides = array<i32>} : memref<48x128xbf16, #tpu.memory_space<vmem>>, vector<4x64xbf16>,
    %4 = arith.truncf %1 : vector<16x64xf32> to vector<16x64xbf16>
    %c4 = arith.constant 4 : index
    %c0_4 = arith.constant 0 : index
    %5 = vector.load %arg11[%c4, %c0_4] : memref<48x128xbf16, #tpu.memory_space<vmem>>, vector<16x64xbf16>
    tpu.vector_store %arg11[%c4, %c0_4], %4 {strides = array<i32>} : memref<48x128xbf16, #tpu.memory_space<vmem>>, vector<16x64xbf16>,
    %cst_5 = arith.constant 0.000000e+00 : bf16
    %6 = vector.broadcast %cst_5 : bf16 to vector<4x64xbf16>
    %c20 = arith.constant 20 : index
    %c0_6 = arith.constant 0 : index
    %7 = vector.load %arg11[%c20, %c0_6] : memref<48x128xbf16, #tpu.memory_space<vmem>>, vector<4x64xbf16>
    tpu.vector_store %arg11[%c20, %c0_6], %6 {strides = array<i32>} : memref<48x128xbf16, #tpu.memory_space<vmem>>, vector<4x64xbf16>,
    %c1 = arith.constant 1 : index
    %c0_7 = arith.constant 0 : index
    %c0_8 = arith.constant 0 : index
    %8 = vector.load %arg1[%c1, %c0_7, %c0_8] : memref<2x16x64xf32, #tpu.memory_space<vmem>>, vector<1x16x64xf32>
    %9 = vector.shape_cast %8 : vector<1x16x64xf32> to vector<16x64xf32>
    %cst_9 = arith.constant 0.000000e+00 : bf16
    %10 = vector.broadcast %cst_9 : bf16 to vector<4x64xbf16>
    %c24 = arith.constant 24 : index
    %c0_10 = arith.constant 0 : index
    %11 = vector.load %arg11[%c24, %c0_10] : memref<48x128xbf16, #tpu.memory_space<vmem>>, vector<4x64xbf16>
    tpu.vector_store %arg11[%c24, %c0_10], %10 {strides = array<i32>} : memref<48x128xbf16, #tpu.memory_space<vmem>>, vector<4x64xbf16>,
    %12 = arith.truncf %9 : vector<16x64xf32> to vector<16x64xbf16>
    %c28 = arith.constant 28 : index
    %c0_11 = arith.constant 0 : index
    %13 = vector.load %arg11[%c28, %c0_11] : memref<48x128xbf16, #tpu.memory_space<vmem>>, vector<16x64xbf16>
    tpu.vector_store %arg11[%c28, %c0_11], %12 {strides = array<i32>} : memref<48x128xbf16, #tpu.memory_space<vmem>>, vector<16x64xbf16>,
    %cst_12 = arith.constant 0.000000e+00 : bf16
    %14 = vector.broadcast %cst_12 : bf16 to vector<4x64xbf16>
    %c44 = arith.constant 44 : index
    %c0_13 = arith.constant 0 : index
    %15 = vector.load %arg11[%c44, %c0_13] : memref<48x128xbf16, #tpu.memory_space<vmem>>, vector<4x64xbf16>
    tpu.vector_store %arg11[%c44, %c0_13], %14 {strides = array<i32>} : memref<48x128xbf16, #tpu.memory_space<vmem>>, vector<4x64xbf16>,
    %c0_14 = arith.constant 0 : index
    %c0_15 = arith.constant 0 : index
    %16 = vector.load %arg11[%c0_14, %c0_15] : memref<48x128xbf16, #tpu.memory_space<vmem>>, vector<16x64xbf16>
    %c0_16 = arith.constant 0 : index
    %c0_17 = arith.constant 0 : index
    %17 = vector.load %arg12[%c0_16, %c0_17] : memref<32x576xbf16, #tpu.memory_space<vmem>>, vector<16x64xbf16>
    tpu.vector_store %arg12[%c0_16, %c0_17], %16 {strides = array<i32>} : memref<32x576xbf16, #tpu.memory_space<vmem>>, vector<16x64xbf16>,
    %c1_18 = arith.constant 1 : index
    %c0_19 = arith.constant 0 : index
    %18 = vector.load %arg11[%c1_18, %c0_19] : memref<48x128xbf16, #tpu.memory_space<vmem>>, vector<16x64xbf16>
    %c0_20 = arith.constant 0 : index
    %c64 = arith.constant 64 : index
    %19 = vector.load %arg12[%c0_20, %c64] : memref<32x576xbf16, #tpu.memory_space<vmem>>, vector<16x64xbf16>
    tpu.vector_store %arg12[%c0_20, %c64], %18 {strides = array<i32>} : memref<32x576xbf16, #tpu.memory_space<vmem>>, vector<16x64xbf16>,
    %c2 = arith.constant 2 : index
    %c0_21 = arith.constant 0 : index
    %20 = vector.load %arg11[%c2, %c0_21] : memref<48x128xbf16, #tpu.memory_space<vmem>>, vector<16x64xbf16>
    %c0_22 = arith.constant 0 : index
    %c128 = arith.constant 128 : index
    %21 = vector.load %arg12[%c0_22, %c128] : memref<32x576xbf16, #tpu.memory_space<vmem>>, vector<16x64xbf16>
    tpu.vector_store %arg12[%c0_22, %c128], %20 {strides = array<i32>} : memref<32x576xbf16, #tpu.memory_space<vmem>>, vector<16x64xbf16>,
    %c3 = arith.constant 3 : index
    %c0_23 = arith.constant 0 : index
    %22 = vector.load %arg11[%c3, %c0_23] : memref<48x128xbf16, #tpu.memory_space<vmem>>, vector<16x64xbf16>
    %c0_24 = arith.constant 0 : index
    %c192 = arith.constant 192 : index
    %23 = vector.load %arg12[%c0_24, %c192] : memref<32x576xbf16, #tpu.memory_space<vmem>>, vector<16x64xbf16>
    tpu.vector_store %arg12[%c0_24, %c192], %22 {strides = array<i32>} : memref<32x576xbf16, #tpu.memory_space<vmem>>, vector<16x64xbf16>,
    %c4_25 = arith.constant 4 : index
    %c0_26 = arith.constant 0 : index
    %24 = vector.load %arg11[%c4_25, %c0_26] : memref<48x128xbf16, #tpu.memory_space<vmem>>, vector<16x64xbf16>
    %c0_27 = arith.constant 0 : index
    %c256 = arith.constant 256 : index
    %25 = vector.load %arg12[%c0_27, %c256] : memref<32x576xbf16, #tpu.memory_space<vmem>>, vector<16x64xbf16>
    tpu.vector_store %arg12[%c0_27, %c256], %24 {strides = array<i32>} : memref<32x576xbf16, #tpu.memory_space<vmem>>, vector<16x64xbf16>,
    %c5 = arith.constant 5 : index
    %c0_28 = arith.constant 0 : index
    %26 = vector.load %arg11[%c5, %c0_28] : memref<48x128xbf16, #tpu.memory_space<vmem>>, vector<16x64xbf16>
    %c0_29 = arith.constant 0 : index
    %c320 = arith.constant 320 : index
    %27 = vector.load %arg12[%c0_29, %c320] : memref<32x576xbf16, #tpu.memory_space<vmem>>, vector<16x64xbf16>
    tpu.vector_store %arg12[%c0_29, %c320], %26 {strides = array<i32>} : memref<32x576xbf16, #tpu.memory_space<vmem>>, vector<16x64xbf16>,
    %c6 = arith.constant 6 : index
    %c0_30 = arith.constant 0 : index
    %28 = vector.load %arg11[%c6, %c0_30] : memref<48x128xbf16, #tpu.memory_space<vmem>>, vector<16x64xbf16>
    %c0_31 = arith.constant 0 : index
    %c384 = arith.constant 384 : index
    %29 = vector.load %arg12[%c0_31, %c384] : memref<32x576xbf16, #tpu.memory_space<vmem>>, vector<16x64xbf16>
    tpu.vector_store %arg12[%c0_31, %c384], %28 {strides = array<i32>} : memref<32x576xbf16, #tpu.memory_space<vmem>>, vector<16x64xbf16>,
    %c7 = arith.constant 7 : index
    %c0_32 = arith.constant 0 : index
    %30 = vector.load %arg11[%c7, %c0_32] : memref<48x128xbf16, #tpu.memory_space<vmem>>, vector<16x64xbf16>
    %c0_33 = arith.constant 0 : index
    %c448 = arith.constant 448 : index
    %31 = vector.load %arg12[%c0_33, %c448] : memref<32x576xbf16, #tpu.memory_space<vmem>>, vector<16x64xbf16>
    tpu.vector_store %arg12[%c0_33, %c448], %30 {strides = array<i32>} : memref<32x576xbf16, #tpu.memory_space<vmem>>, vector<16x64xbf16>,
    %c8 = arith.constant 8 : index
    %c0_34 = arith.constant 0 : index
    %32 = vector.load %arg11[%c8, %c0_34] : memref<48x128xbf16, #tpu.memory_space<vmem>>, vector<16x64xbf16>
    %c0_35 = arith.constant 0 : index
    %c512 = arith.constant 512 : index
    %33 = vector.load %arg12[%c0_35, %c512] : memref<32x576xbf16, #tpu.memory_space<vmem>>, vector<16x64xbf16>
    tpu.vector_store %arg12[%c0_35, %c512], %32 {strides = array<i32>} : memref<32x576xbf16, #tpu.memory_space<vmem>>, vector<16x64xbf16>,
    %c24_36 = arith.constant 24 : index
    %c0_37 = arith.constant 0 : index
    %34 = vector.load %arg11[%c24_36, %c0_37] : memref<48x128xbf16, #tpu.memory_space<vmem>>, vector<16x64xbf16>
    %c16 = arith.constant 16 : index
    %c0_38 = arith.constant 0 : index
    %35 = vector.load %arg12[%c16, %c0_38] : memref<32x576xbf16, #tpu.memory_space<vmem>>, vector<16x64xbf16>
    tpu.vector_store %arg12[%c16, %c0_38], %34 {strides = array<i32>} : memref<32x576xbf16, #tpu.memory_space<vmem>>, vector<16x64xbf16>,
    %c25 = arith.constant 25 : index
    %c0_39 = arith.constant 0 : index
    %36 = vector.load %arg11[%c25, %c0_39] : memref<48x128xbf16, #tpu.memory_space<vmem>>, vector<16x64xbf16>
    %c16_40 = arith.constant 16 : index
    %c64_41 = arith.constant 64 : index
    %37 = vector.load %arg12[%c16_40, %c64_41] : memref<32x576xbf16, #tpu.memory_space<vmem>>, vector<16x64xbf16>
    tpu.vector_store %arg12[%c16_40, %c64_41], %36 {strides = array<i32>} : memref<32x576xbf16, #tpu.memory_space<vmem>>, vector<16x64xbf16>,
    %c26 = arith.constant 26 : index
    %c0_42 = arith.constant 0 : index
    %38 = vector.load %arg11[%c26, %c0_42] : memref<48x128xbf16, #tpu.memory_space<vmem>>, vector<16x64xbf16>
    %c16_43 = arith.constant 16 : index
    %c128_44 = arith.constant 128 : index
    %39 = vector.load %arg12[%c16_43, %c128_44] : memref<32x576xbf16, #tpu.memory_space<vmem>>, vector<16x64xbf16>
    tpu.vector_store %arg12[%c16_43, %c128_44], %38 {strides = array<i32>} : memref<32x576xbf16, #tpu.memory_space<vmem>>, vector<16x64xbf16>,
    %c27 = arith.constant 27 : index
    %c0_45 = arith.constant 0 : index
    %40 = vector.load %arg11[%c27, %c0_45] : memref<48x128xbf16, #tpu.memory_space<vmem>>, vector<16x64xbf16>
    %c16_46 = arith.constant 16 : index
    %c192_47 = arith.constant 192 : index
    %41 = vector.load %arg12[%c16_46, %c192_47] : memref<32x576xbf16, #tpu.memory_space<vmem>>, vector<16x64xbf16>
    tpu.vector_store %arg12[%c16_46, %c192_47], %40 {strides = array<i32>} : memref<32x576xbf16, #tpu.memory_space<vmem>>, vector<16x64xbf16>,
    %c28_48 = arith.constant 28 : index
    %c0_49 = arith.constant 0 : index
    %42 = vector.load %arg11[%c28_48, %c0_49] : memref<48x128xbf16, #tpu.memory_space<vmem>>, vector<16x64xbf16>
    %c16_50 = arith.constant 16 : index
    %c256_51 = arith.constant 256 : index
    %43 = vector.load %arg12[%c16_50, %c256_51] : memref<32x576xbf16, #tpu.memory_space<vmem>>, vector<16x64xbf16>
    tpu.vector_store %arg12[%c16_50, %c256_51], %42 {strides = array<i32>} : memref<32x576xbf16, #tpu.memory_space<vmem>>, vector<16x64xbf16>,
    %c29 = arith.constant 29 : index
    %c0_52 = arith.constant 0 : index
    %44 = vector.load %arg11[%c29, %c0_52] : memref<48x128xbf16, #tpu.memory_space<vmem>>, vector<16x64xbf16>
    %c16_53 = arith.constant 16 : index
    %c320_54 = arith.constant 320 : index
    %45 = vector.load %arg12[%c16_53, %c320_54] : memref<32x576xbf16, #tpu.memory_space<vmem>>, vector<16x64xbf16>
    tpu.vector_store %arg12[%c16_53, %c320_54], %44 {strides = array<i32>} : memref<32x576xbf16, #tpu.memory_space<vmem>>, vector<16x64xbf16>,
    %c30 = arith.constant 30 : index
    %c0_55 = arith.constant 0 : index
    %46 = vector.load %arg11[%c30, %c0_55] : memref<48x128xbf16, #tpu.memory_space<vmem>>, vector<16x64xbf16>
    %c16_56 = arith.constant 16 : index
    %c384_57 = arith.constant 384 : index
    %47 = vector.load %arg12[%c16_56, %c384_57] : memref<32x576xbf16, #tpu.memory_space<vmem>>, vector<16x64xbf16>
    tpu.vector_store %arg12[%c16_56, %c384_57], %46 {strides = array<i32>} : memref<32x576xbf16, #tpu.memory_space<vmem>>, vector<16x64xbf16>,
    %c31 = arith.constant 31 : index
    %c0_58 = arith.constant 0 : index
    %48 = vector.load %arg11[%c31, %c0_58] : memref<48x128xbf16, #tpu.memory_space<vmem>>, vector<16x64xbf16>
    %c16_59 = arith.constant 16 : index
    %c448_60 = arith.constant 448 : index
    %49 = vector.load %arg12[%c16_59, %c448_60] : memref<32x576xbf16, #tpu.memory_space<vmem>>, vector<16x64xbf16>
    tpu.vector_store %arg12[%c16_59, %c448_60], %48 {strides = array<i32>} : memref<32x576xbf16, #tpu.memory_space<vmem>>, vector<16x64xbf16>,
    %c32 = arith.constant 32 : index
    %c0_61 = arith.constant 0 : index
    %50 = vector.load %arg11[%c32, %c0_61] : memref<48x128xbf16, #tpu.memory_space<vmem>>, vector<16x64xbf16>
    %c16_62 = arith.constant 16 : index
    %c512_63 = arith.constant 512 : index
    %51 = vector.load %arg12[%c16_62, %c512_63] : memref<32x576xbf16, #tpu.memory_space<vmem>>, vector<16x64xbf16>
    tpu.vector_store %arg12[%c16_62, %c512_63], %50 {strides = array<i32>} : memref<32x576xbf16, #tpu.memory_space<vmem>>, vector<16x64xbf16>,
    %c0_64 = arith.constant 0 : index
    %c0_65 = arith.constant 0 : index
    %52 = vector.load %arg12[%c0_64, %c0_65] : memref<32x576xbf16, #tpu.memory_space<vmem>>, vector<32x576xbf16>
    %c0_66 = arith.constant 0 : index
    %c0_67 = arith.constant 0 : index
    %53 = vector.load %arg2[%c0_66, %c0_67] : memref<576x64xbf16, #tpu.memory_space<vmem>>, vector<576x64xbf16>
    %cst_68 = arith.constant dense<0.000000e+00> : vector<32x64xf32>
    %54 = tpu.matmul %52, %53, %cst_68 {dimension_numbers = #tpu.dot_dimension_numbers<[1], [0], [0], [1], [0, 0, 1, 1], [], []>} : vector<32x576xbf16>, vector<576x64xbf16>, vector<32x64xf32> -> vector<32x64xf32>
    %c0_69 = arith.constant 0 : index
    %c0_70 = arith.constant 0 : index
    %55 = vector.load %arg3[%c0_69, %c0_70] : memref<1x64xf32, #tpu.memory_space<vmem>>, vector<1x64xf32>
    %56 = vector.broadcast %55 : vector<1x64xf32> to vector<32x64xf32>
    %57 = arith.addf %54, %56 : vector<32x64xf32>
    %cst_71 = arith.constant 0.000000e+00 : f32
    %58 = vector.broadcast %cst_71 : f32 to vector<32x64xf32>
    %59 = arith.maximumf %57, %58 : vector<32x64xf32>
    %60 = vector.extract_strided_slice %59 {offsets = [0, 0], sizes = [16, 64], strides = [1, 1]} : vector<32x64xf32> to vector<16x64xf32>
    %cst_72 = arith.constant 0.000000e+00 : bf16
    %61 = vector.broadcast %cst_72 : bf16 to vector<3x64xbf16>
    %c0_73 = arith.constant 0 : index
    %c0_74 = arith.constant 0 : index
    %62 = vector.load %arg11[%c0_73, %c0_74] : memref<48x128xbf16, #tpu.memory_space<vmem>>, vector<3x64xbf16>
    tpu.vector_store %arg11[%c0_73, %c0_74], %61 {strides = array<i32>} : memref<48x128xbf16, #tpu.memory_space<vmem>>, vector<3x64xbf16>,
    %63 = arith.truncf %60 : vector<16x64xf32> to vector<16x64xbf16>
    %c3_75 = arith.constant 3 : index
    %c0_76 = arith.constant 0 : index
    %64 = vector.load %arg11[%c3_75, %c0_76] : memref<48x128xbf16, #tpu.memory_space<vmem>>, vector<16x64xbf16>
    tpu.vector_store %arg11[%c3_75, %c0_76], %63 {strides = array<i32>} : memref<48x128xbf16, #tpu.memory_space<vmem>>, vector<16x64xbf16>,
    %cst_77 = arith.constant 0.000000e+00 : bf16
    %65 = vector.broadcast %cst_77 : bf16 to vector<3x64xbf16>
    %c19 = arith.constant 19 : index
    %c0_78 = arith.constant 0 : index
    %66 = vector.load %arg11[%c19, %c0_78] : memref<48x128xbf16, #tpu.memory_space<vmem>>, vector<3x64xbf16>
    tpu.vector_store %arg11[%c19, %c0_78], %65 {strides = array<i32>} : memref<48x128xbf16, #tpu.memory_space<vmem>>, vector<3x64xbf16>,
    %67 = vector.extract_strided_slice %59 {offsets = [16, 0], sizes = [16, 64], strides = [1, 1]} : vector<32x64xf32> to vector<16x64xf32>
    %cst_79 = arith.constant 0.000000e+00 : bf16
    %68 = vector.broadcast %cst_79 : bf16 to vector<3x64xbf16>
    %c22 = arith.constant 22 : index
    %c0_80 = arith.constant 0 : index
    %69 = vector.load %arg11[%c22, %c0_80] : memref<48x128xbf16, #tpu.memory_space<vmem>>, vector<3x64xbf16>
    tpu.vector_store %arg11[%c22, %c0_80], %68 {strides = array<i32>} : memref<48x128xbf16, #tpu.memory_space<vmem>>, vector<3x64xbf16>,
    %70 = arith.truncf %67 : vector<16x64xf32> to vector<16x64xbf16>
    %c25_81 = arith.constant 25 : index
    %c0_82 = arith.constant 0 : index
    %71 = vector.load %arg11[%c25_81, %c0_82] : memref<48x128xbf16, #tpu.memory_space<vmem>>, vector<16x64xbf16>
    tpu.vector_store %arg11[%c25_81, %c0_82], %70 {strides = array<i32>} : memref<48x128xbf16, #tpu.memory_space<vmem>>, vector<16x64xbf16>,
    %cst_83 = arith.constant 0.000000e+00 : bf16
    %72 = vector.broadcast %cst_83 : bf16 to vector<3x64xbf16>
    %c41 = arith.constant 41 : index
    %c0_84 = arith.constant 0 : index
    %73 = vector.load %arg11[%c41, %c0_84] : memref<48x128xbf16, #tpu.memory_space<vmem>>, vector<3x64xbf16>
    tpu.vector_store %arg11[%c41, %c0_84], %72 {strides = array<i32>} : memref<48x128xbf16, #tpu.memory_space<vmem>>, vector<3x64xbf16>,
    %c0_85 = arith.constant 0 : index
    %c0_86 = arith.constant 0 : index
    %74 = vector.load %arg11[%c0_85, %c0_86] : memref<48x128xbf16, #tpu.memory_space<vmem>>, vector<16x64xbf16>
    %c0_87 = arith.constant 0 : index
    %c0_88 = arith.constant 0 : index
    %75 = vector.load %arg12[%c0_87, %c0_88] : memref<32x576xbf16, #tpu.memory_space<vmem>>, vector<16x64xbf16>
    tpu.vector_store %arg12[%c0_87, %c0_88], %74 {strides = array<i32>} : memref<32x576xbf16, #tpu.memory_space<vmem>>, vector<16x64xbf16>,
    %c1_89 = arith.constant 1 : index
    %c0_90 = arith.constant 0 : index
    %76 = vector.load %arg11[%c1_89, %c0_90] : memref<48x128xbf16, #tpu.memory_space<vmem>>, vector<16x64xbf16>
    %c0_91 = arith.constant 0 : index
    %c64_92 = arith.constant 64 : index
    %77 = vector.load %arg12[%c0_91, %c64_92] : memref<32x576xbf16, #tpu.memory_space<vmem>>, vector<16x64xbf16>
    tpu.vector_store %arg12[%c0_91, %c64_92], %76 {strides = array<i32>} : memref<32x576xbf16, #tpu.memory_space<vmem>>, vector<16x64xbf16>,
    %c2_93 = arith.constant 2 : index
    %c0_94 = arith.constant 0 : index
    %78 = vector.load %arg11[%c2_93, %c0_94] : memref<48x128xbf16, #tpu.memory_space<vmem>>, vector<16x64xbf16>
    %c0_95 = arith.constant 0 : index
    %c128_96 = arith.constant 128 : index
    %79 = vector.load %arg12[%c0_95, %c128_96] : memref<32x576xbf16, #tpu.memory_space<vmem>>, vector<16x64xbf16>
    tpu.vector_store %arg12[%c0_95, %c128_96], %78 {strides = array<i32>} : memref<32x576xbf16, #tpu.memory_space<vmem>>, vector<16x64xbf16>,
    %c3_97 = arith.constant 3 : index
    %c0_98 = arith.constant 0 : index
    %80 = vector.load %arg11[%c3_97, %c0_98] : memref<48x128xbf16, #tpu.memory_space<vmem>>, vector<16x64xbf16>
    %c0_99 = arith.constant 0 : index
    %c192_100 = arith.constant 192 : index
    %81 = vector.load %arg12[%c0_99, %c192_100] : memref<32x576xbf16, #tpu.memory_space<vmem>>, vector<16x64xbf16>
    tpu.vector_store %arg12[%c0_99, %c192_100], %80 {strides = array<i32>} : memref<32x576xbf16, #tpu.memory_space<vmem>>, vector<16x64xbf16>,
    %c4_101 = arith.constant 4 : index
    %c0_102 = arith.constant 0 : index
    %82 = vector.load %arg11[%c4_101, %c0_102] : memref<48x128xbf16, #tpu.memory_space<vmem>>, vector<16x64xbf16>
    %c0_103 = arith.constant 0 : index
    %c256_104 = arith.constant 256 : index
    %83 = vector.load %arg12[%c0_103, %c256_104] : memref<32x576xbf16, #tpu.memory_space<vmem>>, vector<16x64xbf16>
    tpu.vector_store %arg12[%c0_103, %c256_104], %82 {strides = array<i32>} : memref<32x576xbf16, #tpu.memory_space<vmem>>, vector<16x64xbf16>,
    %c5_105 = arith.constant 5 : index
    %c0_106 = arith.constant 0 : index
    %84 = vector.load %arg11[%c5_105, %c0_106] : memref<48x128xbf16, #tpu.memory_space<vmem>>, vector<16x64xbf16>
    %c0_107 = arith.constant 0 : index
    %c320_108 = arith.constant 320 : index
    %85 = vector.load %arg12[%c0_107, %c320_108] : memref<32x576xbf16, #tpu.memory_space<vmem>>, vector<16x64xbf16>
    tpu.vector_store %arg12[%c0_107, %c320_108], %84 {strides = array<i32>} : memref<32x576xbf16, #tpu.memory_space<vmem>>, vector<16x64xbf16>,
    %c6_109 = arith.constant 6 : index
    %c0_110 = arith.constant 0 : index
    %86 = vector.load %arg11[%c6_109, %c0_110] : memref<48x128xbf16, #tpu.memory_space<vmem>>, vector<16x64xbf16>
    %c0_111 = arith.constant 0 : index
    %c384_112 = arith.constant 384 : index
    %87 = vector.load %arg12[%c0_111, %c384_112] : memref<32x576xbf16, #tpu.memory_space<vmem>>, vector<16x64xbf16>
    tpu.vector_store %arg12[%c0_111, %c384_112], %86 {strides = array<i32>} : memref<32x576xbf16, #tpu.memory_space<vmem>>, vector<16x64xbf16>,
    %c22_113 = arith.constant 22 : index
    %c0_114 = arith.constant 0 : index
    %88 = vector.load %arg11[%c22_113, %c0_114] : memref<48x128xbf16, #tpu.memory_space<vmem>>, vector<16x64xbf16>
    %c16_115 = arith.constant 16 : index
    %c0_116 = arith.constant 0 : index
    %89 = vector.load %arg12[%c16_115, %c0_116] : memref<32x576xbf16, #tpu.memory_space<vmem>>, vector<16x64xbf16>
    tpu.vector_store %arg12[%c16_115, %c0_116], %88 {strides = array<i32>} : memref<32x576xbf16, #tpu.memory_space<vmem>>, vector<16x64xbf16>,
    %c23 = arith.constant 23 : index
    %c0_117 = arith.constant 0 : index
    %90 = vector.load %arg11[%c23, %c0_117] : memref<48x128xbf16, #tpu.memory_space<vmem>>, vector<16x64xbf16>
    %c16_118 = arith.constant 16 : index
    %c64_119 = arith.constant 64 : index
    %91 = vector.load %arg12[%c16_118, %c64_119] : memref<32x576xbf16, #tpu.memory_space<vmem>>, vector<16x64xbf16>
    tpu.vector_store %arg12[%c16_118, %c64_119], %90 {strides = array<i32>} : memref<32x576xbf16, #tpu.memory_space<vmem>>, vector<16x64xbf16>,
    %c24_120 = arith.constant 24 : index
    %c0_121 = arith.constant 0 : index
    %92 = vector.load %arg11[%c24_120, %c0_121] : memref<48x128xbf16, #tpu.memory_space<vmem>>, vector<16x64xbf16>
    %c16_122 = arith.constant 16 : index
    %c128_123 = arith.constant 128 : index
    %93 = vector.load %arg12[%c16_122, %c128_123] : memref<32x576xbf16, #tpu.memory_space<vmem>>, vector<16x64xbf16>
    tpu.vector_store %arg12[%c16_122, %c128_123], %92 {strides = array<i32>} : memref<32x576xbf16, #tpu.memory_space<vmem>>, vector<16x64xbf16>,
    %c25_124 = arith.constant 25 : index
    %c0_125 = arith.constant 0 : index
    %94 = vector.load %arg11[%c25_124, %c0_125] : memref<48x128xbf16, #tpu.memory_space<vmem>>, vector<16x64xbf16>
    %c16_126 = arith.constant 16 : index
    %c192_127 = arith.constant 192 : index
    %95 = vector.load %arg12[%c16_126, %c192_127] : memref<32x576xbf16, #tpu.memory_space<vmem>>, vector<16x64xbf16>
    tpu.vector_store %arg12[%c16_126, %c192_127], %94 {strides = array<i32>} : memref<32x576xbf16, #tpu.memory_space<vmem>>, vector<16x64xbf16>,
    %c26_128 = arith.constant 26 : index
    %c0_129 = arith.constant 0 : index
    %96 = vector.load %arg11[%c26_128, %c0_129] : memref<48x128xbf16, #tpu.memory_space<vmem>>, vector<16x64xbf16>
    %c16_130 = arith.constant 16 : index
    %c256_131 = arith.constant 256 : index
    %97 = vector.load %arg12[%c16_130, %c256_131] : memref<32x576xbf16, #tpu.memory_space<vmem>>, vector<16x64xbf16>
    tpu.vector_store %arg12[%c16_130, %c256_131], %96 {strides = array<i32>} : memref<32x576xbf16, #tpu.memory_space<vmem>>, vector<16x64xbf16>,
    %c27_132 = arith.constant 27 : index
    %c0_133 = arith.constant 0 : index
    %98 = vector.load %arg11[%c27_132, %c0_133] : memref<48x128xbf16, #tpu.memory_space<vmem>>, vector<16x64xbf16>
    %c16_134 = arith.constant 16 : index
    %c320_135 = arith.constant 320 : index
    %99 = vector.load %arg12[%c16_134, %c320_135] : memref<32x576xbf16, #tpu.memory_space<vmem>>, vector<16x64xbf16>
    tpu.vector_store %arg12[%c16_134, %c320_135], %98 {strides = array<i32>} : memref<32x576xbf16, #tpu.memory_space<vmem>>, vector<16x64xbf16>,
    %c28_136 = arith.constant 28 : index
    %c0_137 = arith.constant 0 : index
    %100 = vector.load %arg11[%c28_136, %c0_137] : memref<48x128xbf16, #tpu.memory_space<vmem>>, vector<16x64xbf16>
    %c16_138 = arith.constant 16 : index
    %c384_139 = arith.constant 384 : index
    %101 = vector.load %arg12[%c16_138, %c384_139] : memref<32x576xbf16, #tpu.memory_space<vmem>>, vector<16x64xbf16>
    tpu.vector_store %arg12[%c16_138, %c384_139], %100 {strides = array<i32>} : memref<32x576xbf16, #tpu.memory_space<vmem>>, vector<16x64xbf16>,
    %c0_140 = arith.constant 0 : index
    %c0_141 = arith.constant 0 : index
    %102 = vector.load %arg12[%c0_140, %c0_141] : memref<32x576xbf16, #tpu.memory_space<vmem>>, vector<32x448xbf16>
    %c0_142 = arith.constant 0 : index
    %c0_143 = arith.constant 0 : index
    %103 = vector.load %arg4[%c0_142, %c0_143] : memref<448x64xbf16, #tpu.memory_space<vmem>>, vector<448x64xbf16>
    %cst_144 = arith.constant dense<0.000000e+00> : vector<32x64xf32>
    %104 = tpu.matmul %102, %103, %cst_144 {dimension_numbers = #tpu.dot_dimension_numbers<[1], [0], [0], [1], [0, 0, 1, 1], [], []>} : vector<32x448xbf16>, vector<448x64xbf16>, vector<32x64xf32> -> vector<32x64xf32>
    %c0_145 = arith.constant 0 : index
    %c0_146 = arith.constant 0 : index
    %105 = vector.load %arg5[%c0_145, %c0_146] : memref<1x64xf32, #tpu.memory_space<vmem>>, vector<1x64xf32>
    %106 = vector.broadcast %105 : vector<1x64xf32> to vector<32x64xf32>
    %107 = arith.addf %104, %106 : vector<32x64xf32>
    %cst_147 = arith.constant 0.000000e+00 : f32
    %108 = vector.broadcast %cst_147 : f32 to vector<32x64xf32>
    %109 = arith.maximumf %107, %108 : vector<32x64xf32>
    %110 = vector.extract_strided_slice %109 {offsets = [0, 0], sizes = [16, 64], strides = [1, 1]} : vector<32x64xf32> to vector<16x64xf32>
    %cst_148 = arith.constant 0.000000e+00 : bf16
    %111 = vector.broadcast %cst_148 : bf16 to vector<2x64xbf16>
    %c0_149 = arith.constant 0 : index
    %c0_150 = arith.constant 0 : index
    %112 = vector.load %arg11[%c0_149, %c0_150] : memref<48x128xbf16, #tpu.memory_space<vmem>>, vector<2x64xbf16>
    tpu.vector_store %arg11[%c0_149, %c0_150], %111 {strides = array<i32>} : memref<48x128xbf16, #tpu.memory_space<vmem>>, vector<2x64xbf16>,
    %113 = arith.truncf %110 : vector<16x64xf32> to vector<16x64xbf16>
    %c2_151 = arith.constant 2 : index
    %c0_152 = arith.constant 0 : index
    %114 = vector.load %arg11[%c2_151, %c0_152] : memref<48x128xbf16, #tpu.memory_space<vmem>>, vector<16x64xbf16>
    tpu.vector_store %arg11[%c2_151, %c0_152], %113 {strides = array<i32>} : memref<48x128xbf16, #tpu.memory_space<vmem>>, vector<16x64xbf16>,
    %cst_153 = arith.constant 0.000000e+00 : bf16
    %115 = vector.broadcast %cst_153 : bf16 to vector<2x64xbf16>
    %c18 = arith.constant 18 : index
    %c0_154 = arith.constant 0 : index
    %116 = vector.load %arg11[%c18, %c0_154] : memref<48x128xbf16, #tpu.memory_space<vmem>>, vector<2x64xbf16>
    tpu.vector_store %arg11[%c18, %c0_154], %115 {strides = array<i32>} : memref<48x128xbf16, #tpu.memory_space<vmem>>, vector<2x64xbf16>,
    %117 = vector.extract_strided_slice %109 {offsets = [16, 0], sizes = [16, 64], strides = [1, 1]} : vector<32x64xf32> to vector<16x64xf32>
    %cst_155 = arith.constant 0.000000e+00 : bf16
    %118 = vector.broadcast %cst_155 : bf16 to vector<2x64xbf16>
    %c20_156 = arith.constant 20 : index
    %c0_157 = arith.constant 0 : index
    %119 = vector.load %arg11[%c20_156, %c0_157] : memref<48x128xbf16, #tpu.memory_space<vmem>>, vector<2x64xbf16>
    tpu.vector_store %arg11[%c20_156, %c0_157], %118 {strides = array<i32>} : memref<48x128xbf16, #tpu.memory_space<vmem>>, vector<2x64xbf16>,
    %120 = arith.truncf %117 : vector<16x64xf32> to vector<16x64xbf16>
    %c22_158 = arith.constant 22 : index
    %c0_159 = arith.constant 0 : index
    %121 = vector.load %arg11[%c22_158, %c0_159] : memref<48x128xbf16, #tpu.memory_space<vmem>>, vector<16x64xbf16>
    tpu.vector_store %arg11[%c22_158, %c0_159], %120 {strides = array<i32>} : memref<48x128xbf16, #tpu.memory_space<vmem>>, vector<16x64xbf16>,
    %cst_160 = arith.constant 0.000000e+00 : bf16
    %122 = vector.broadcast %cst_160 : bf16 to vector<2x64xbf16>
    %c38 = arith.constant 38 : index
    %c0_161 = arith.constant 0 : index
    %123 = vector.load %arg11[%c38, %c0_161] : memref<48x128xbf16, #tpu.memory_space<vmem>>, vector<2x64xbf16>
    tpu.vector_store %arg11[%c38, %c0_161], %122 {strides = array<i32>} : memref<48x128xbf16, #tpu.memory_space<vmem>>, vector<2x64xbf16>,
    %c0_162 = arith.constant 0 : index
    %c0_163 = arith.constant 0 : index
    %124 = vector.load %arg11[%c0_162, %c0_163] : memref<48x128xbf16, #tpu.memory_space<vmem>>, vector<16x64xbf16>
    %c0_164 = arith.constant 0 : index
    %c0_165 = arith.constant 0 : index
    %125 = vector.load %arg12[%c0_164, %c0_165] : memref<32x576xbf16, #tpu.memory_space<vmem>>, vector<16x64xbf16>
    tpu.vector_store %arg12[%c0_164, %c0_165], %124 {strides = array<i32>} : memref<32x576xbf16, #tpu.memory_space<vmem>>, vector<16x64xbf16>,
    %c1_166 = arith.constant 1 : index
    %c0_167 = arith.constant 0 : index
    %126 = vector.load %arg11[%c1_166, %c0_167] : memref<48x128xbf16, #tpu.memory_space<vmem>>, vector<16x64xbf16>
    %c0_168 = arith.constant 0 : index
    %c64_169 = arith.constant 64 : index
    %127 = vector.load %arg12[%c0_168, %c64_169] : memref<32x576xbf16, #tpu.memory_space<vmem>>, vector<16x64xbf16>
    tpu.vector_store %arg12[%c0_168, %c64_169], %126 {strides = array<i32>} : memref<32x576xbf16, #tpu.memory_space<vmem>>, vector<16x64xbf16>,
    %c2_170 = arith.constant 2 : index
    %c0_171 = arith.constant 0 : index
    %128 = vector.load %arg11[%c2_170, %c0_171] : memref<48x128xbf16, #tpu.memory_space<vmem>>, vector<16x64xbf16>
    %c0_172 = arith.constant 0 : index
    %c128_173 = arith.constant 128 : index
    %129 = vector.load %arg12[%c0_172, %c128_173] : memref<32x576xbf16, #tpu.memory_space<vmem>>, vector<16x64xbf16>
    tpu.vector_store %arg12[%c0_172, %c128_173], %128 {strides = array<i32>} : memref<32x576xbf16, #tpu.memory_space<vmem>>, vector<16x64xbf16>,
    %c3_174 = arith.constant 3 : index
    %c0_175 = arith.constant 0 : index
    %130 = vector.load %arg11[%c3_174, %c0_175] : memref<48x128xbf16, #tpu.memory_space<vmem>>, vector<16x64xbf16>
    %c0_176 = arith.constant 0 : index
    %c192_177 = arith.constant 192 : index
    %131 = vector.load %arg12[%c0_176, %c192_177] : memref<32x576xbf16, #tpu.memory_space<vmem>>, vector<16x64xbf16>
    tpu.vector_store %arg12[%c0_176, %c192_177], %130 {strides = array<i32>} : memref<32x576xbf16, #tpu.memory_space<vmem>>, vector<16x64xbf16>,
    %c4_178 = arith.constant 4 : index
    %c0_179 = arith.constant 0 : index
    %132 = vector.load %arg11[%c4_178, %c0_179] : memref<48x128xbf16, #tpu.memory_space<vmem>>, vector<16x64xbf16>
    %c0_180 = arith.constant 0 : index
    %c256_181 = arith.constant 256 : index
    %133 = vector.load %arg12[%c0_180, %c256_181] : memref<32x576xbf16, #tpu.memory_space<vmem>>, vector<16x64xbf16>
    tpu.vector_store %arg12[%c0_180, %c256_181], %132 {strides = array<i32>} : memref<32x576xbf16, #tpu.memory_space<vmem>>, vector<16x64xbf16>,
    %c20_182 = arith.constant 20 : index
    %c0_183 = arith.constant 0 : index
    %134 = vector.load %arg11[%c20_182, %c0_183] : memref<48x128xbf16, #tpu.memory_space<vmem>>, vector<16x64xbf16>
    %c16_184 = arith.constant 16 : index
    %c0_185 = arith.constant 0 : index
    %135 = vector.load %arg12[%c16_184, %c0_185] : memref<32x576xbf16, #tpu.memory_space<vmem>>, vector<16x64xbf16>
    tpu.vector_store %arg12[%c16_184, %c0_185], %134 {strides = array<i32>} : memref<32x576xbf16, #tpu.memory_space<vmem>>, vector<16x64xbf16>,
    %c21 = arith.constant 21 : index
    %c0_186 = arith.constant 0 : index
    %136 = vector.load %arg11[%c21, %c0_186] : memref<48x128xbf16, #tpu.memory_space<vmem>>, vector<16x64xbf16>
    %c16_187 = arith.constant 16 : index
    %c64_188 = arith.constant 64 : index
    %137 = vector.load %arg12[%c16_187, %c64_188] : memref<32x576xbf16, #tpu.memory_space<vmem>>, vector<16x64xbf16>
    tpu.vector_store %arg12[%c16_187, %c64_188], %136 {strides = array<i32>} : memref<32x576xbf16, #tpu.memory_space<vmem>>, vector<16x64xbf16>,
    %c22_189 = arith.constant 22 : index
    %c0_190 = arith.constant 0 : index
    %138 = vector.load %arg11[%c22_189, %c0_190] : memref<48x128xbf16, #tpu.memory_space<vmem>>, vector<16x64xbf16>
    %c16_191 = arith.constant 16 : index
    %c128_192 = arith.constant 128 : index
    %139 = vector.load %arg12[%c16_191, %c128_192] : memref<32x576xbf16, #tpu.memory_space<vmem>>, vector<16x64xbf16>
    tpu.vector_store %arg12[%c16_191, %c128_192], %138 {strides = array<i32>} : memref<32x576xbf16, #tpu.memory_space<vmem>>, vector<16x64xbf16>,
    %c23_193 = arith.constant 23 : index
    %c0_194 = arith.constant 0 : index
    %140 = vector.load %arg11[%c23_193, %c0_194] : memref<48x128xbf16, #tpu.memory_space<vmem>>, vector<16x64xbf16>
    %c16_195 = arith.constant 16 : index
    %c192_196 = arith.constant 192 : index
    %141 = vector.load %arg12[%c16_195, %c192_196] : memref<32x576xbf16, #tpu.memory_space<vmem>>, vector<16x64xbf16>
    tpu.vector_store %arg12[%c16_195, %c192_196], %140 {strides = array<i32>} : memref<32x576xbf16, #tpu.memory_space<vmem>>, vector<16x64xbf16>,
    %c24_197 = arith.constant 24 : index
    %c0_198 = arith.constant 0 : index
    %142 = vector.load %arg11[%c24_197, %c0_198] : memref<48x128xbf16, #tpu.memory_space<vmem>>, vector<16x64xbf16>
    %c16_199 = arith.constant 16 : index
    %c256_200 = arith.constant 256 : index
    %143 = vector.load %arg12[%c16_199, %c256_200] : memref<32x576xbf16, #tpu.memory_space<vmem>>, vector<16x64xbf16>
    tpu.vector_store %arg12[%c16_199, %c256_200], %142 {strides = array<i32>} : memref<32x576xbf16, #tpu.memory_space<vmem>>, vector<16x64xbf16>,
    %c0_201 = arith.constant 0 : index
    %c0_202 = arith.constant 0 : index
    %144 = vector.load %arg12[%c0_201, %c0_202] : memref<32x576xbf16, #tpu.memory_space<vmem>>, vector<32x320xbf16>
    %c0_203 = arith.constant 0 : index
    %c0_204 = arith.constant 0 : index
    %145 = vector.load %arg6[%c0_203, %c0_204] : memref<320x128xbf16, #tpu.memory_space<vmem>>, vector<320x128xbf16>
    %cst_205 = arith.constant dense<0.000000e+00> : vector<32x128xf32>
    %146 = tpu.matmul %144, %145, %cst_205 {dimension_numbers = #tpu.dot_dimension_numbers<[1], [0], [0], [1], [0, 0, 1, 1], [], []>} : vector<32x320xbf16>, vector<320x128xbf16>, vector<32x128xf32> -> vector<32x128xf32>
    %c0_206 = arith.constant 0 : index
    %c0_207 = arith.constant 0 : index
    %147 = vector.load %arg7[%c0_206, %c0_207] : memref<1x128xf32, #tpu.memory_space<vmem>>, vector<1x128xf32>
    %148 = vector.broadcast %147 : vector<1x128xf32> to vector<32x128xf32>
    %149 = arith.addf %146, %148 : vector<32x128xf32>
    %cst_208 = arith.constant 0.000000e+00 : f32
    %150 = vector.broadcast %cst_208 : f32 to vector<32x128xf32>
    %151 = arith.maximumf %149, %150 : vector<32x128xf32>
    %152 = vector.extract_strided_slice %151 {offsets = [0, 0], sizes = [16, 128], strides = [1, 1]} : vector<32x128xf32> to vector<16x128xf32>
    %cst_209 = arith.constant 0.000000e+00 : bf16
    %153 = vector.broadcast %cst_209 : bf16 to vector<1x128xbf16>
    %c0_210 = arith.constant 0 : index
    %c0_211 = arith.constant 0 : index
    %154 = vector.load %arg11[%c0_210, %c0_211] : memref<48x128xbf16, #tpu.memory_space<vmem>>, vector<1x128xbf16>
    tpu.vector_store %arg11[%c0_210, %c0_211], %153 {strides = array<i32>} : memref<48x128xbf16, #tpu.memory_space<vmem>>, vector<1x128xbf16>,
    %155 = arith.truncf %152 : vector<16x128xf32> to vector<16x128xbf16>
    %c1_212 = arith.constant 1 : index
    %c0_213 = arith.constant 0 : index
    %156 = vector.load %arg11[%c1_212, %c0_213] : memref<48x128xbf16, #tpu.memory_space<vmem>>, vector<16x128xbf16>
    tpu.vector_store %arg11[%c1_212, %c0_213], %155 {strides = array<i32>} : memref<48x128xbf16, #tpu.memory_space<vmem>>, vector<16x128xbf16>,
    %cst_214 = arith.constant 0.000000e+00 : bf16
    %157 = vector.broadcast %cst_214 : bf16 to vector<1x128xbf16>
    %c17 = arith.constant 17 : index
    %c0_215 = arith.constant 0 : index
    %158 = vector.load %arg11[%c17, %c0_215] : memref<48x128xbf16, #tpu.memory_space<vmem>>, vector<1x128xbf16>
    tpu.vector_store %arg11[%c17, %c0_215], %157 {strides = array<i32>} : memref<48x128xbf16, #tpu.memory_space<vmem>>, vector<1x128xbf16>,
    %159 = vector.extract_strided_slice %151 {offsets = [16, 0], sizes = [16, 128], strides = [1, 1]} : vector<32x128xf32> to vector<16x128xf32>
    %cst_216 = arith.constant 0.000000e+00 : bf16
    %160 = vector.broadcast %cst_216 : bf16 to vector<1x128xbf16>
    %c18_217 = arith.constant 18 : index
    %c0_218 = arith.constant 0 : index
    %161 = vector.load %arg11[%c18_217, %c0_218] : memref<48x128xbf16, #tpu.memory_space<vmem>>, vector<1x128xbf16>
    tpu.vector_store %arg11[%c18_217, %c0_218], %160 {strides = array<i32>} : memref<48x128xbf16, #tpu.memory_space<vmem>>, vector<1x128xbf16>,
    %162 = arith.truncf %159 : vector<16x128xf32> to vector<16x128xbf16>
    %c19_219 = arith.constant 19 : index
    %c0_220 = arith.constant 0 : index
    %163 = vector.load %arg11[%c19_219, %c0_220] : memref<48x128xbf16, #tpu.memory_space<vmem>>, vector<16x128xbf16>
    tpu.vector_store %arg11[%c19_219, %c0_220], %162 {strides = array<i32>} : memref<48x128xbf16, #tpu.memory_space<vmem>>, vector<16x128xbf16>,
    %cst_221 = arith.constant 0.000000e+00 : bf16
    %164 = vector.broadcast %cst_221 : bf16 to vector<1x128xbf16>
    %c35 = arith.constant 35 : index
    %c0_222 = arith.constant 0 : index
    %165 = vector.load %arg11[%c35, %c0_222] : memref<48x128xbf16, #tpu.memory_space<vmem>>, vector<1x128xbf16>
    tpu.vector_store %arg11[%c35, %c0_222], %164 {strides = array<i32>} : memref<48x128xbf16, #tpu.memory_space<vmem>>, vector<1x128xbf16>,
    %c0_223 = arith.constant 0 : index
    %c0_224 = arith.constant 0 : index
    %166 = vector.load %arg11[%c0_223, %c0_224] : memref<48x128xbf16, #tpu.memory_space<vmem>>, vector<16x128xbf16>
    %c0_225 = arith.constant 0 : index
    %c0_226 = arith.constant 0 : index
    %167 = vector.load %arg12[%c0_225, %c0_226] : memref<32x576xbf16, #tpu.memory_space<vmem>>, vector<16x128xbf16>
    tpu.vector_store %arg12[%c0_225, %c0_226], %166 {strides = array<i32>} : memref<32x576xbf16, #tpu.memory_space<vmem>>, vector<16x128xbf16>,
    %c1_227 = arith.constant 1 : index
    %c0_228 = arith.constant 0 : index
    %168 = vector.load %arg11[%c1_227, %c0_228] : memref<48x128xbf16, #tpu.memory_space<vmem>>, vector<16x128xbf16>
    %c0_229 = arith.constant 0 : index
    %c128_230 = arith.constant 128 : index
    %169 = vector.load %arg12[%c0_229, %c128_230] : memref<32x576xbf16, #tpu.memory_space<vmem>>, vector<16x128xbf16>
    tpu.vector_store %arg12[%c0_229, %c128_230], %168 {strides = array<i32>} : memref<32x576xbf16, #tpu.memory_space<vmem>>, vector<16x128xbf16>,
    %c2_231 = arith.constant 2 : index
    %c0_232 = arith.constant 0 : index
    %170 = vector.load %arg11[%c2_231, %c0_232] : memref<48x128xbf16, #tpu.memory_space<vmem>>, vector<16x128xbf16>
    %c0_233 = arith.constant 0 : index
    %c256_234 = arith.constant 256 : index
    %171 = vector.load %arg12[%c0_233, %c256_234] : memref<32x576xbf16, #tpu.memory_space<vmem>>, vector<16x128xbf16>
    tpu.vector_store %arg12[%c0_233, %c256_234], %170 {strides = array<i32>} : memref<32x576xbf16, #tpu.memory_space<vmem>>, vector<16x128xbf16>,
    %c18_235 = arith.constant 18 : index
    %c0_236 = arith.constant 0 : index
    %172 = vector.load %arg11[%c18_235, %c0_236] : memref<48x128xbf16, #tpu.memory_space<vmem>>, vector<16x128xbf16>
    %c16_237 = arith.constant 16 : index
    %c0_238 = arith.constant 0 : index
    %173 = vector.load %arg12[%c16_237, %c0_238] : memref<32x576xbf16, #tpu.memory_space<vmem>>, vector<16x128xbf16>
    tpu.vector_store %arg12[%c16_237, %c0_238], %172 {strides = array<i32>} : memref<32x576xbf16, #tpu.memory_space<vmem>>, vector<16x128xbf16>,
    %c19_239 = arith.constant 19 : index
    %c0_240 = arith.constant 0 : index
    %174 = vector.load %arg11[%c19_239, %c0_240] : memref<48x128xbf16, #tpu.memory_space<vmem>>, vector<16x128xbf16>
    %c16_241 = arith.constant 16 : index
    %c128_242 = arith.constant 128 : index
    %175 = vector.load %arg12[%c16_241, %c128_242] : memref<32x576xbf16, #tpu.memory_space<vmem>>, vector<16x128xbf16>
    tpu.vector_store %arg12[%c16_241, %c128_242], %174 {strides = array<i32>} : memref<32x576xbf16, #tpu.memory_space<vmem>>, vector<16x128xbf16>,
    %c20_243 = arith.constant 20 : index
    %c0_244 = arith.constant 0 : index
    %176 = vector.load %arg11[%c20_243, %c0_244] : memref<48x128xbf16, #tpu.memory_space<vmem>>, vector<16x128xbf16>
    %c16_245 = arith.constant 16 : index
    %c256_246 = arith.constant 256 : index
    %177 = vector.load %arg12[%c16_245, %c256_246] : memref<32x576xbf16, #tpu.memory_space<vmem>>, vector<16x128xbf16>
    tpu.vector_store %arg12[%c16_245, %c256_246], %176 {strides = array<i32>} : memref<32x576xbf16, #tpu.memory_space<vmem>>, vector<16x128xbf16>,
    %c0_247 = arith.constant 0 : index
    %c0_248 = arith.constant 0 : index
    %178 = vector.load %arg12[%c0_247, %c0_248] : memref<32x576xbf16, #tpu.memory_space<vmem>>, vector<32x384xbf16>
    %c0_249 = arith.constant 0 : index
    %c0_250 = arith.constant 0 : index
    %179 = vector.load %arg8[%c0_249, %c0_250] : memref<384x128xbf16, #tpu.memory_space<vmem>>, vector<384x128xbf16>
    %cst_251 = arith.constant dense<0.000000e+00> : vector<32x128xf32>
    %180 = tpu.matmul %178, %179, %cst_251 {dimension_numbers = #tpu.dot_dimension_numbers<[1], [0], [0], [1], [0, 0, 1, 1], [], []>} : vector<32x384xbf16>, vector<384x128xbf16>, vector<32x128xf32> -> vector<32x128xf32>
    %c0_252 = arith.constant 0 : index
    %c0_253 = arith.constant 0 : index
    %181 = vector.load %arg9[%c0_252, %c0_253] : memref<1x128xf32, #tpu.memory_space<vmem>>, vector<1x128xf32>
    %182 = vector.broadcast %181 : vector<1x128xf32> to vector<32x128xf32>
    %183 = arith.addf %180, %182 : vector<32x128xf32>
    %cst_254 = arith.constant 0.000000e+00 : f32
    %184 = vector.broadcast %cst_254 : f32 to vector<32x128xf32>
    %185 = arith.maximumf %183, %184 : vector<32x128xf32>
    %186 = vector.extract_strided_slice %185 {offsets = [0, 0], sizes = [16, 128], strides = [1, 1]} : vector<32x128xf32> to vector<16x128xf32>
    %c0_255 = arith.constant 0 : index
    %c0_256 = arith.constant 0 : index
    %c0_257 = arith.constant 0 : index
    %187 = vector.load %arg10[%c0_255, %c0_256, %c0_257] : memref<2x16x128xf32, #tpu.memory_space<vmem>>, vector<1x16x128xf32>
    %188 = vector.shape_cast %187 : vector<1x16x128xf32> to vector<16x128xf32>
    %189 = vector.shape_cast %186 : vector<16x128xf32> to vector<1x16x128xf32>
    tpu.vector_store %arg10[%c0_255, %c0_256, %c0_257], %189 {strides = array<i32>} : memref<2x16x128xf32, #tpu.memory_space<vmem>>, vector<1x16x128xf32>,
    %190 = vector.extract_strided_slice %185 {offsets = [16, 0], sizes = [16, 128], strides = [1, 1]} : vector<32x128xf32> to vector<16x128xf32>
    %c1_258 = arith.constant 1 : index
    %c0_259 = arith.constant 0 : index
    %c0_260 = arith.constant 0 : index
    %191 = vector.load %arg10[%c1_258, %c0_259, %c0_260] : memref<2x16x128xf32, #tpu.memory_space<vmem>>, vector<1x16x128xf32>
    %192 = vector.shape_cast %191 : vector<1x16x128xf32> to vector<16x128xf32>
    %193 = vector.shape_cast %190 : vector<16x128xf32> to vector<1x16x128xf32>
    tpu.vector_store %arg10[%c1_258, %c0_259, %c0_260], %193 {strides = array<i32>} : memref<2x16x128xf32, #tpu.memory_space<vmem>>, vector<1x16x128xf32>,
    return
  }
  func.func @transform_0(%arg0: i32) -> (i32, i32, i32) {
    %c0_i32 = arith.constant 0 : i32
    %c0_i32_0 = arith.constant 0 : i32
    %c0_i32_1 = arith.constant 0 : i32
    return %arg0, %c0_i32, %c0_i32_0 : i32, i32, i32
  }
  func.func @transform_1(%arg0: i32) -> (i32, i32) {
    %c0_i32 = arith.constant 0 : i32
    %c0_i32_0 = arith.constant 0 : i32
    %c0_i32_1 = arith.constant 0 : i32
    return %c0_i32, %c0_i32_0 : i32, i32
  }
  func.func @transform_2(%arg0: i32) -> (i32, i32) {
    %c0_i32 = arith.constant 0 : i32
    %c0_i32_0 = arith.constant 0 : i32
    %c0_i32_1 = arith.constant 0 : i32
    return %c0_i32, %c0_i32_0 : i32, i32
  }
  func.func @transform_3(%arg0: i32) -> (i32, i32) {
    %c0_i32 = arith.constant 0 : i32
    %c0_i32_0 = arith.constant 0 : i32
    %c0_i32_1 = arith.constant 0 : i32
    return %c0_i32, %c0_i32_0 : i32, i32
  }
  func.func @transform_4(%arg0: i32) -> (i32, i32) {
    %c0_i32 = arith.constant 0 : i32
    %c0_i32_0 = arith.constant 0 : i32
    %c0_i32_1 = arith.constant 0 : i32
    return %c0_i32, %c0_i32_0 : i32, i32
  }
  func.func @transform_5(%arg0: i32) -> (i32, i32) {
    %c0_i32 = arith.constant 0 : i32
    %c0_i32_0 = arith.constant 0 : i32
    %c0_i32_1 = arith.constant 0 : i32
    return %c0_i32, %c0_i32_0 : i32, i32
  }
  func.func @transform_6(%arg0: i32) -> (i32, i32) {
    %c0_i32 = arith.constant 0 : i32
    %c0_i32_0 = arith.constant 0 : i32
    %c0_i32_1 = arith.constant 0 : i32
    return %c0_i32, %c0_i32_0 : i32, i32
  }
  func.func @transform_7(%arg0: i32) -> (i32, i32) {
    %c0_i32 = arith.constant 0 : i32
    %c0_i32_0 = arith.constant 0 : i32
    %c0_i32_1 = arith.constant 0 : i32
    return %c0_i32, %c0_i32_0 : i32, i32
  }
  func.func @transform_8(%arg0: i32) -> (i32, i32) {
    %c0_i32 = arith.constant 0 : i32
    %c0_i32_0 = arith.constant 0 : i32
    %c0_i32_1 = arith.constant 0 : i32
    return %c0_i32, %c0_i32_0 : i32, i32
  }
  func.func @transform_9(%arg0: i32) -> (i32, i32, i32) {
    %c0_i32 = arith.constant 0 : i32
    %c0_i32_0 = arith.constant 0 : i32
    %c0_i32_1 = arith.constant 0 : i32
    return %arg0, %c0_i32, %c0_i32_0 : i32, i32, i32
  }
}

</mosaic_0001>

<bundles_post_ra>
// kernel: tpu_custom_call.1
= control target key start
LH: loop header
LB: loop body
LE: loop exit
PB: predicated region body
PF: predicated region fallthrough
CT: control target
= control target key end

     0   :  { %14 = vsyncpa [#allocation5], 0  ;;  %s3969_s0 = inlined_call_operand.vmem [shape: f32[4,16,64], index: 0, kind: input, shape index: {}]   ;;  %s3970_s1 = inlined_call_operand.vmem [shape: bf16[576,64], index: 1, kind: input, shape index: {}]   ;;  %s3971_s2 = inlined_call_operand.vmem [shape: f32[1,64], index: 2, kind: input, shape index: {}]   ;;  %s3972_s3 = inlined_call_operand.vmem [shape: bf16[448,64], index: 3, kind: input, shape index: {}]   ;;  %s3973_s4 = inlined_call_operand.vmem [shape: f32[1,64], index: 4, kind: input, shape index: {}]   ;;  %s3974_s5 = inlined_call_operand.vmem [shape: bf16[320,128], index: 5, kind: input, shape index: {}]   ;;  %s3975_s6 = inlined_call_operand.vmem [shape: f32[1,128], index: 6, kind: input, shape index: {}]   ;;  %s3976_s7 = inlined_call_operand.vmem [shape: bf16[384,128], index: 7, kind: input, shape index: {}]   ;;  %s3977_s8 = inlined_call_operand.vmem [shape: f32[1,128], index: 8, kind: input, shape index: {}]   ;;  %s3978_s9 = inlined_call_operand.hbm [shape: f32[4,16,128], index: 9, kind: output, shape index: {}]  }
   0x1   :  { %16 = vsyncpa [#allocation5 + $0x1], 0  ;;  %s3262_s30 = smov 0   ;;  %s3264_s10 = smov 0  }
   0x2   :  { %s3266_s11 = smov 0   ;;  %s3268_s12 = smov 0  }
   0x3 LB: > { %s3283_s13 = sadd.s32 4294967295, %s3205_s12   ;;  %s2647_s14 = sadd.s32 4294967294, %s3205_s12   ;;  %s3205_s12 = sphi %s3268_s12, %s4043_s12   ;;  %s3201_s11 = sphi %s3266_s11, %s4042_s11   ;;  %s3197_s10 = sphi %s3264_s10, %s4041_s10   ;;  %s3193_s30 = sphi %s3262_s30, %s4040_s30  }
   0x4   : > { %s3287_s15 = sadd.s32 1, %s3205_s12   ;;  %s223_s16 = sadd.s32 1, %s3201_s11 }
   0x5   : > { %s220_s17 = ssub.s32 %s3205_s12, %s3287_s15  ;;  %p233_p0 = scmp.ne.s32.totalorder %s3201_s11, %s3197_s10 }
   0x6   : > { %p221_p1 = scmp.eq.s32.totalorder %s220_s17, 0  ;;  %p234_p2 = scmp.eq.s32.totalorder %s3283_s13, 1 }
   0x7   : > { %p239_p3 = scmp.ne.s32.totalorder %s3197_s10, %s3193_s30  ;;  %p240_p4 = scmp.eq.s32.totalorder %s2647_s14, 1 }
   0x8   : > { %s3298_s18 = scalar_select %p221_p1, %s3201_s11, %s223_s16  }
   0x9   : > { %p3300_p5 = por %p234_p2, %p233_p0  ;;  %p3304_p6 = por %p240_p4, %p239_p3 }
   0xa   : > { %p2650_p7 = scmp.ge.s32.totalorder %s3205_s12, 1  ;;  %p292_p8 = scmp.lt.s32.totalorder %s3205_s12, 3 }
   0xc   : > { %p293_p9 = pnand %p2650_p7, %p292_p8 }
   0xd   : > { %s2652_s21 = sshll.u32 (!%p293_p9), %s3283_s13, 1  ;;  %vm340_vm0 = vcmask (!%p293_p9), 517120   ;;  %vm354_vm1 = vcmask (!%p293_p9), 521220   ;;  %v3207_v0 = vmov (!%p293_p9), 0   ;;  %vm360_vm2 = vcmask (!%p293_p9), 523270   ;;  %v3035_v8 = vld [vmem:[%s3970_s1 + $0x40] sm:$0xff] (!%p293_p9)  }
   0xe   : > { %296 = sbr.rel (%p293_p9) target bundleno = 1436 (0x59c), region = 56  ;;  %p330_p10 = scmp.lt.s32.totalorder (!%p293_p9), %s2652_s21, 3  ;;  %341 = vst.msk [vmem:[#allocation2] sm:$0x3] (!%p293_p9), %vm340_vm0, %v3207_v0  ;;  %vm349_vm3 = vcmask (!%p293_p9), 519170   ;;  %vm3982_vm4 = vcmask (!%p293_p9), 1040384   ;;  %2786 = vmatprep.subr.bf16.mxu0 (!%p293_p9), %v3035_v8 }
   0xf   : > { %355 = vst.msk [vmem:[#allocation2 + $0x8] sm:$0x30] (!%p293_p9), %vm354_vm1, %v3207_v0  ;;  %vm613_vm5 = vsmask.f32 (!%p293_p9), 256  ;;  %vm346_vm7 = vcmask (!%p293_p9), 523266   ;;  %vm362_vm8 = vcmask (!%p293_p9), 521216  }
  0x10   : > { %364 = vst.msk [vmem:[#allocation2 + $0x10] sm:$0xc0] (!%p293_p9), %vm360_vm2, %v3207_v0  ;;  %vm3320_vm6 = vmand (!%p293_p9), %vm3982_vm4, %vm613_vm5  ;;  %vm3979_vm9 = vsmask.f32 (!%p293_p9), 1280  ;;  %v3036_v10 = vld [vmem:[%s3970_s1] sm:$0xff] (!%p293_p9)   ;;  %v3037_v13 = vld [vmem:[%s3970_s1 + $0x48] sm:$0xff] (!%p293_p9)  }
  0x11   : > { %350 = vst.msk [vmem:[#allocation2 + $0x8] sm:$0xc] (!%p293_p9), %vm349_vm3, %v3207_v0  ;;  %vm3336_vm10 = vmand (!%p293_p9), %vm340_vm0, %vm3979_vm9  ;;  %2787 = vmatpush3.bf16.msra.mxu0 (!%p293_p9), %v3036_v10  ;;  %v3038_v14 = vld [vmem:[%s3970_s1 + $0x8] sm:$0xff] (!%p293_p9)   ;;  %v3039_v15 = vld [vmem:[%s3970_s1 + $0xc0] sm:$0xff] (!%p293_p9)   ;;  %vm400_vm11 = vsmask.f32 (!%p293_p9), 6400 }
  0x12   : > { %2788 = vmatprep.subr.bf16.mxu0 (!%p293_p9), %v3037_v13  ;;  %v3040_v16 = vld [vmem:[%s3970_s1 + $0x80] sm:$0xff] (!%p293_p9)   ;;  %2814 = vmatprep.subr.bf16.mxu1 (!%p293_p9), %v3039_v15  ;;  %v3041_v18 = vld [vmem:[%s3970_s1 + $0x50] sm:$0xff] (!%p293_p9)   ;;  %vm3980_vm12 = vsmask.f32 (!%p293_p9), 2304  ;;  %v3043_v20 = vld [vmem:[%s3970_s1 + $0xc8] sm:$0xff] (!%p293_p9)   ;;  %vm366_vm14 = vcmask (!%p293_p9), 523264  }
  0x13   : > { %2815 = vmatpush3.bf16.msra.mxu1 (!%p293_p9), %v3040_v16  ;;  %v3042_v19 = vld [vmem:[%s3970_s1 + $0x10] sm:$0xff] (!%p293_p9)   ;;  %vm370_vm13 = vsmask.f32 (!%p293_p9), 7424  ;;  %vm3988_vm15 = vsmask.f32 (!%p293_p9), 3328  ;;  %v3044_v59 = vld [vmem:[%s3970_s1 + $0x88] sm:$0xff] (!%p293_p9)  }
  0x14   : > { %2816 = vmatprep.subr.bf16.mxu1 (!%p293_p9), %v3043_v20  ;;  %v3047_v16 = vld [vmem:[%s3970_s1 + $0xd0] sm:$0xff] (!%p293_p9)   ;;  %vm1123_vm3 = vcmask (!%p293_p9), 520195   ;;  %v3088_v12 = vld [vmem:[%s3972_s3 + $0x20] sm:$0xff] (!%p293_p9)   ;;  %s2785_s28 = sshll.u32 (!%p293_p9), %s3283_s13, 9  ;;  %s3209_s13 = smov (!%p293_p9), [#allocation4]  }
  0x15   : > { %s4045_s21 = smov (!%p330_p10, %s2652_s21), 3  ;;  %v3353_v17 = vld [vmem:[#allocation2] sm:$0x3]  ;;  %2789 = vmatpush3.bf16.msra.mxu0 %v3038_v14  ;;  %s3924_s16 = scalar_lea.hbm %s3978_s9, %s2785_s28 }
  0x16   : > { %s2783_s22 = sshll.u32 %s4045_s21, 4  ;;  %2790 = vmatprep.subr.bf16.mxu0 %v3041_v18  ;;  %v1097_v32 = vsel %vm3336_vm10, 0, %v3353_v17  ;;  %s326_s21 = sand.u32 1, %s3197_s10  }
  0x17   : > { %s334_s25 = scalar_lea.vmem %s3969_s0, %s2783_s22  ;;  %s3208_s22 = smov 64   ;;  %2817 = vmatpush3.bf16.msra.mxu1 %v3044_v59 }
  0x18   : > { %v338_v2 = vld [vmem:[%s334_s25] sm:$0xff]  ;;  %v339_v3 = vld [vmem:[%s334_s25 + $0x8] sm:$0xff]  ;;  %v2655_v4 = vld [vmem:[%s334_s25 + $0x10] sm:$0xff]  ;;  %2818 = vmatprep.subr.bf16.mxu1 %v3047_v16  ;;  %s3147_s23 = sshll.u32 %s3209_s13, 4  ;;  %s3148_s23 = int_to_ptr.vmem [resolvable:$false] %s3147_s23 }
  0x19   : > { %v342_v5 = vpack.c.bf16 %v339_v3, %v338_v2  ;;  %v2656_v6 = vld [vmem:[%s334_s25 + $0x18] sm:$0xff]  ;;  %2791 = vmatpush3.bf16.msra.mxu0 %v3042_v19  ;;  %s2651_s25 = sshll.u32 %s326_s21, 5  ;;  %s3149_s24 = scalar_lea.vmem %s3148_s23, 1024 }
  0x1a   : > { %v356_v7 = vpack.c.bf16 %v2656_v6, %v2655_v4  ;;  %v3045_v3 = vld [vmem:[%s3970_s1 + $0x58] sm:$0xff]   ;;  %s328_s26 = scalar_lea.vmem [#allocation4], %s2651_s25 }
  0x1b   : > { %v344_v9 = vrot.slane %v342_v5, 6  ;;  %2792 = vmatprep.subr.bf16.mxu0 %v3045_v3  ;;  %s2585_s27 = sshll.u32 %s328_s26, 4  ;;  %s3919_s27 = int_to_ptr.vmem [resolvable:$true] %s2585_s27 }
  0x1c   : > { %v358_v11 = vrot.slane %v356_v7, 2  ;;  %s3143_s17 = scalar_lea.vmem %s3919_s27, 512  ;;  %p3150_p0 = scmp.lt.s32.totalorder %s3919_s27, %s3148_s23 }
  0x1d   : > { %347 = vst.msk [vmem:[#allocation2] sm:$0xfc] %vm346_vm7, %v344_v9  ;;  %vm3987_vm7 = vcmask 1046528   ;;  %p3144_p11 = scmp.ne.s32.totalorder %s3919_s27, %s3143_s17  ;;  %p3151_p1 = scmp.lt.s32.totalorder %s3149_s24, %s3143_s17 }
  0x1e   : > { %348 = vst.msk [vmem:[#allocation2 + $0x8] sm:$0x3] %vm340_vm0, %v344_v9  ;;  %vm468_vm0 = vsmask.f32 4352  ;;  %v3046_v9 = vld [vmem:[%s3970_s1 + $0x18] sm:$0xff]  }
  0x1f   : > { %361 = vst.msk [vmem:[#allocation2 + $0x8] sm:$0xc0] %vm360_vm2, %v358_v11  ;;  %vm3990_vm2 = vsmask.f32 5376  ;;  %2793 = vmatpush3.bf16.msra.mxu0 %v3046_v9  ;;  %p3145_p12 = pnand %p3144_p11, %p3300_p5  ;;  %p3152_p2 = por %p3151_p1, %p3150_p0 }
  0x20   : > { %363 = vst.msk [vmem:[#allocation2 + $0x10] sm:$0x3f] %vm362_vm8, %v358_v11  ;;  %vm3428_vm8 = vmand %vm1123_vm3, %vm468_vm0  ;;  %vm3986_vm3 = vcmask 1043456  }
  0x21   : > { %p3146_p13 = pneg %p3145_p12 }
  0x23   : > { %p3153_p3 = pnand %p3152_p2, %p3146_p13 }
  0x24   : > { %v398_v21 = vld [vmem:[#allocation2] sm:$0xfe] }
  0x25   : > { %v399_v22 = vld [vmem:[#allocation2 + $0x8] sm:$0x3]  ;;  %v368_v23 = vld [vmem:[#allocation2] sm:$0xff]  ;;  %v402_v24 = vshrl.u32 %v398_v21, 16  ;;  %v405_v25 = vshll.u32 %v398_v21, 16 }
  0x26   : > { %v410_v26 = vshrl.u32 %v399_v22, 16  ;;  %v413_v27 = vshll.u32 %v399_v22, 16  ;;  %v543_v28 = vld [vmem:[#allocation2 + $0x8] sm:$0xe0]  ;;  %367 = vst.msk [vmem:[#allocation3] sm:$0xff] %vm366_vm14, %v368_v23  ;;  %v372_v45 = vshrl.u32 %v368_v23, 16 }
  0x27   : > { %v544_v29 = vld [vmem:[#allocation2 + $0x10] sm:$0x3f]  ;;  %v547_v30 = vshrl.u32 %v543_v28, 16  ;;  %v550_v31 = vshll.u32 %v543_v28, 16  ;;  %v404_v33 = vrot.slane %v402_v24, 1  ;;  %v407_v34 = vrot.slane %v405_v25, 2 }
  0x28   : > { %v412_v35 = vrot.slane %v410_v26, 1  ;;  %v415_v36 = vrot.slane %v413_v27, 2  ;;  %v369_v37 = vld [vmem:[#allocation2 + $0x8] sm:$0x1]  ;;  %v555_v40 = vshrl.u32 %v544_v29, 16  ;;  %v558_v41 = vshll.u32 %v544_v29, 16 }
  0x29   : > { %v549_v38 = vrot.slane %v547_v30, 5  ;;  %v552_v39 = vrot.slane %v550_v31, 6  ;;  %v509_v42 = vld [vmem:[#allocation2 + $0x8] sm:$0xf0]  ;;  %v408_v43 = vor.u32 %v407_v34, %v404_v33  ;;  %v374_v46 = vshll.u32 %v368_v23, 16  ;;  %v3368_v53 = vld [vmem:[#allocation2 + $0x10] sm:$0xff] }
  0x2a   : > { %v416_v44 = vor.u32 %v415_v36, %v412_v35  ;;  %v510_v47 = vld [vmem:[#allocation2 + $0x10] sm:$0x1f]  ;;  %v557_v49 = vrot.slane %v555_v40, 5  ;;  %v560_v50 = vrot.slane %v558_v41, 6  ;;  %v379_v51 = vshll.u32 %v369_v37, 16  ;;  %631 = vst.msk [vmem:[#allocation3 + $0x48] sm:$0xff] %vm366_vm14, %v3368_v53 }
  0x2b   : > { %v553_v48 = vor.u32 %v552_v39, %v549_v38  ;;  %v466_v52 = vld [vmem:[#allocation2] sm:$0xf8]  ;;  %v376_v55 = vrot.slane %v374_v46, 1  ;;  %v513_v56 = vshrl.u32 %v509_v42, 16  ;;  %v516_v57 = vshll.u32 %v509_v42, 16  ;;  %v3048_v27 = vld [vmem:[%s3970_s1 + $0x90] sm:$0xff]  }
  0x2c   : > { %v417_v54 = vsel %vm400_vm11, %v408_v43, %v416_v44  ;;  %v467_v58 = vld [vmem:[#allocation2 + $0x8] sm:$0xf]  ;;  %v561_v60 = vor.u32 %v560_v50, %v557_v49  ;;  %v381_v61 = vrot.slane %v379_v51, 1  ;;  %v521_v62 = vshrl.u32 %v510_v47, 16  ;;  %v432_v2 = vld [vmem:[#allocation2] sm:$0xfc]  ;;  %2819 = vmatpush3.bf16.msra.mxu1 %v3048_v27 }
  0x2d   : > { %418 = vrot.lane.b32.xlu0 %v417_v54, %s3208_s22  ;;  %v524_v63 = vshll.u32 %v510_v47, 16  ;;  %v377_v4 = vor.u32 %v376_v55, %v372_v45  ;;  %v515_v5 = vrot.slane %v513_v56, 4  ;;  %v518_v6 = vrot.slane %v516_v57, 5  ;;  %v433_v8 = vld [vmem:[#allocation2 + $0x8] sm:$0x7]  ;;  %v3049_v46 = vld [vmem:[%s3970_s1 + $0x60] sm:$0xff]  }
  0x2e   : > { %v470_v7 = vshrl.u32 %v466_v52, 16  ;;  %v562_v10 = vsel %vm3980_vm12, %v553_v48, %v561_v60  ;;  %v523_v11 = vrot.slane %v521_v62, 4  ;;  %v473_v14 = vshll.u32 %v466_v52, 16  ;;  %v611_v15 = vld [vmem:[#allocation2 + $0x8] sm:$0x80]  ;;  %2794 = vmatprep.subr.bf16.mxu0 %v3049_v46  ;;  %v3050_v56 = vld [vmem:[%s3970_s1 + $0x20] sm:$0xff]  }
  0x2f   : > { %v526_v13 = vrot.slane %v524_v63, 5  ;;  %563 = vrot.lane.b32.xlu1 %v562_v10, %s3208_s22  ;;  %v382_v18 = vsel %vm370_vm13, %v377_v4, %v381_v61  ;;  %v519_v19 = vor.u32 %v518_v6, %v515_v5  ;;  %v478_v21 = vshrl.u32 %v467_v58, 16  ;;  %v577_v22 = vld [vmem:[#allocation2 + $0x8] sm:$0xc0]  ;;  %v578_v33 = vld [vmem:[#allocation2 + $0x10] sm:$0x7f]  ;;  %2795 = vmatpush3.bf16.msra.mxu0 %v3050_v56 }
  0x30   : > { %v472_v20 = vrot.slane %v470_v7, 3  ;;  %v475_v24 = vrot.slane %v473_v14, 4  ;;  %v481_v25 = vshll.u32 %v467_v58, 16  ;;  %v436_v26 = vshrl.u32 %v432_v2, 16  ;;  %v3051_v61 = vld [vmem:[%s3970_s1 + $0xd8] sm:$0xff]   ;;  %v3053_v5 = vld [vmem:[%s3970_s1 + $0x68] sm:$0xff]  }
  0x31   : > { %383 = vrot.lane.b32.xlu0 %v382_v18, %s3208_s22  ;;  %v527_v23 = vor.u32 %v526_v13, %v523_v11  ;;  %v480_v28 = vrot.slane %v478_v21, 3  ;;  %v439_v29 = vshll.u32 %v432_v2, 16  ;;  %v444_v30 = vshrl.u32 %v433_v8, 16  ;;  %v3052_v2 = vld [vmem:[%s3970_s1 + $0x98] sm:$0xff]   ;;  %2820 = vmatprep.subr.bf16.mxu1 %v3051_v61  ;;  %v389_v6 = vld [vmem:[#allocation2 + $0x8] sm:$0x1] }
  0x32   : > { %v447_v31 = vshll.u32 %v433_v8, 16  ;;  %v476_v35 = vor.u32 %v475_v24, %v472_v20  ;;  %v483_v36 = vrot.slane %v481_v25, 4  ;;  %v438_v37 = vrot.slane %v436_v26, 2  ;;  %2821 = vmatpush3.bf16.msra.mxu1 %v3052_v2  ;;  %v388_v7 = vld [vmem:[#allocation2] sm:$0xfe]  ;;  %2796 = vmatprep.subr.bf16.mxu0 %v3053_v5  ;;  %v3054_v13 = vld [vmem:[%s3970_s1 + $0x28] sm:$0xff]  }
  0x33   : > { %v528_v34 = vsel %vm3988_vm15, %v519_v19, %v527_v23  ;;  %v441_v38 = vrot.slane %v439_v29, 3  ;;  %v446_v39 = vrot.slane %v444_v30, 2  ;;  %v615_v41 = vshrl.u32 %v611_v15, 16  ;;  %v1125_v8 = vld [vmem:[#allocation2 + $0x8] sm:$0x18]  ;;  %2797 = vmatpush3.bf16.msra.mxu0 %v3054_v13  ;;  %v3055_v19 = vld [vmem:[%s3970_s1 + $0xe0] sm:$0xff]  }
  0x34   : > { %529 = vrot.lane.b32.xlu1 %v528_v34, %s3208_s22  ;;  %v449_v40 = vrot.slane %v447_v31, 3  ;;  %v484_v42 = vor.u32 %v483_v36, %v480_v28  ;;  %v619_v43 = vshrl.u32 %v3368_v53, 16  ;;  %v622_v44 = vshll.u32 %v3368_v53, 16  ;;  %1098 = vst [vmem:[#allocation2] sm:$0x3] %v1097_v32  ;;  %v3056_v21 = vld [vmem:[%s3970_s1 + $0xa0] sm:$0xff]   ;;  %2822 = vmatprep.subr.bf16.mxu1 %v3055_v19 }
  0x35   : > { %v581_v45 = vshrl.u32 %v577_v22, 16  ;;  %v442_v47 = vor.u32 %v441_v38, %v438_v37  ;;  %v617_v49 = vrot.slane %v615_v41, 7  ;;  %v584_v50 = vshll.u32 %v577_v22, 16  ;;  %v534_v14 = vld [vmem:[#allocation2 + $0x10] sm:$0x1f]  ;;  %v3059_v34 = vld [vmem:[%s3970_s1 + $0xe8] sm:$0xff]  }
  0x36   : > { %v450_v48 = vor.u32 %v449_v40, %v446_v39  ;;  %v485_v51 = vsel %vm468_vm0, %v476_v35, %v484_v42  ;;  %v621_v52 = vrot.slane %v619_v43, 7  ;;  %v589_v55 = vshrl.u32 %v578_v33, 16  ;;  %v533_v15 = vld [vmem:[#allocation2 + $0x8] sm:$0xe0]  ;;  %v3057_v23 = vld [vmem:[%s3970_s1 + $0x70] sm:$0xff]   ;;  %2823 = vmatpush3.bf16.msra.mxu1 %v3056_v21  ;;  %v3061_v38 = vld [vmem:[%s3970_s1 + $0x78] sm:$0xff]  }
  0x37   : > { %v583_v54 = vrot.slane %v581_v45, 6  ;;  %486 = vrot.lane.b32.xlu0 %v485_v51, %s3208_s22  ;;  %v586_v57 = vrot.slane %v584_v50, 7  ;;  %v592_v58 = vshll.u32 %v578_v33, 16  ;;  %v394_v9 = vrot.slane %v389_v6, 1  ;;  %v3058_v24 = vld [vmem:[%s3970_s1 + $0x30] sm:$0xff]   ;;  %2798 = vmatprep.subr.bf16.mxu0 %v3057_v23  ;;  %v3060_v37 = vld [vmem:[%s3970_s1 + $0xa8] sm:$0xff]  }
  0x38   : > { %v451_v53 = vsel %vm3990_vm2, %v442_v47, %v450_v48  ;;  %v624_v59 = vor.u32 %v622_v44, %v621_v52  ;;  %v591_v60 = vrot.slane %v589_v55, 6  ;;  %v393_v10 = vrot.slane %v388_v7, 1  ;;  %v501_v25 = vld [vmem:[#allocation2 + $0x10] sm:$0xf]  ;;  %v490_v26 = vld [vmem:[#allocation2] sm:$0xf0]  ;;  %2799 = vmatpush3.bf16.msra.mxu0 %v3058_v24  ;;  %2824 = vmatprep.subr.bf16.mxu1 %v3059_v34 }
  0x39   : > { %452 = vrot.lane.b32.xlu1 %v451_v53, %s3208_s22  ;;  %v587_v62 = vor.u32 %v586_v57, %v583_v54  ;;  %v594_v63 = vrot.slane %v592_v58, 7  ;;  %v539_v32 = vrot.slane %v534_v14, 5  ;;  %v538_v18 = vrot.slane %v533_v15, 5  ;;  %v491_v28 = vld [vmem:[#allocation2 + $0x8] sm:$0xf]  ;;  %2800 = vmatprep.subr.bf16.mxu0 %v3061_v38  ;;  %v3062_v43 = vld [vmem:[%s3970_s1 + $0x38] sm:$0xff]  }
  0x3a   : > { %v625_v3 = vsel %vm613_vm5, %v617_v49, %v624_v59  ;;  %vm3981_vm5 = vcmask 1042432   ;;  %v395_v17 = vsel %vm3987_vm7, %v393_v10, %v394_v9  ;;  %v1126_v22 = vsel %vm3428_vm8, 0, %v1125_v8  ;;  %v500_v30 = vld [vmem:[#allocation2 + $0x8] sm:$0xf0]  ;;  %v456_v39 = vld [vmem:[#allocation2] sm:$0xf8]  ;;  %2825 = vmatpush3.bf16.msra.mxu1 %v3060_v37 }
  0x3b   : > { %626 = vrot.lane.b32.xlu0 %v625_v3, %s3208_s22  ;;  %v595_v4 = vor.u32 %v594_v63, %v591_v60  ;;  %397 = vst.msk [vmem:[#allocation3 + $0x8] sm:$0xff] %vm366_vm14, %v395_v17  ;;  %v540_v20 = vsel %vm3981_vm5, %v538_v18, %v539_v32  ;;  %v505_v27 = vrot.slane %v501_v25, 4  ;;  %v495_v29 = vrot.slane %v490_v26, 4  ;;  %1127 = vst [vmem:[#allocation2 + $0x8] sm:$0x18] %v1126_v22  ;;  %v3063_v49 = vld [vmem:[%s3970_s1 + $0xf0] sm:$0xff]  }
  0x3c   : > { %542 = vst.msk [vmem:[#allocation3 + $0x30] sm:$0xff] %vm366_vm14, %v540_v20  ;;  %v496_v31 = vrot.slane %v491_v28, 4  ;;  %v504_v33 = vrot.slane %v500_v30, 4  ;;  %v457_v40 = vld [vmem:[#allocation2 + $0x8] sm:$0x7]  ;;  %vm460_vm8 = vcmask 1044480   ;;  %2801 = vmatpush3.bf16.msra.mxu0 %v3062_v43  ;;  %2826 = vmatprep.subr.bf16.mxu1 %v3063_v49 }
  0x3d   : > { %v596_v11 = vsel %vm3979_vm9, %v587_v62, %v595_v4  ;;  %v461_v41 = vrot.slane %v456_v39, 3  ;;  %v462_v42 = vrot.slane %v457_v40, 3  ;;  %v423_v44 = vld [vmem:[#allocation2 + $0x8] sm:$0x3]  ;;  %vm3985_vm9 = vcmask 1045504   ;;  %v3064_v51 = vld [vmem:[%s3970_s1 + $0xb0] sm:$0xff]  }
  0x3e   : > { %597 = vrot.lane.b32.xlu1 %v596_v11, %s3208_s22  ;;  %v497_v35 = vsel %vm3986_vm3, %v495_v29, %v496_v31  ;;  %v506_v36 = vsel %vm3986_vm3, %v504_v33, %v505_v27  ;;  %v422_v45 = vld [vmem:[#allocation2] sm:$0xfc]  ;;  %v428_v47 = vrot.slane %v423_v44, 2  ;;  %2827 = vmatpush3.bf16.msra.mxu1 %v3064_v51  ;;  %v3066_v54 = vld [vmem:[%s3970_s1 + $0xf8] sm:$0xff]   ;;  %v601_v56 = vld [vmem:[#allocation2 + $0x8] sm:$0x80] }
  0x3f   : > { %499 = vst.msk [vmem:[#allocation3 + $0x20] sm:$0xff] %vm366_vm14, %v497_v35  ;;  %508 = vst.msk [vmem:[#allocation3 + $0x28] sm:$0xff] %vm366_vm14, %v506_v36  ;;  %v463_v46 = vsel %vm460_vm8, %v461_v41, %v462_v42  ;;  %v427_v48 = vrot.slane %v422_v45, 2  ;;  %v3065_v52 = vld [vmem:[%s3970_s1 + $0x100] sm:$0xff]   ;;  %v3067_v55 = vld [vmem:[%s3970_s1 + $0xb8] sm:$0xff]   ;;  %2828 = vmatprep.subr.bf16.mxu1 %v3066_v54  ;;  %v606_v57 = vrot.slane %v601_v56, 7 }
  0x40   : > { %465 = vst.msk [vmem:[#allocation3 + $0x18] sm:$0xff] %vm366_vm14, %v463_v46  ;;  %2948 = vmatprep.subr.bf16.mxu0 %v3065_v52  ;;  %v602_v53 = vld [vmem:[#allocation2 + $0x10] sm:$0x7f]  ;;  %v567_v59 = vld [vmem:[#allocation2 + $0x8] sm:$0xc0]  ;;  %vm3984_vm12 = vcmask 1041408  }
  0x41   : > { %v429_v50 = vsel %vm3985_vm9, %v427_v48, %v428_v47  ;;  %v607_v58 = vrot.slane %v602_v53, 7  ;;  %v568_v60 = vld [vmem:[#allocation2 + $0x10] sm:$0x3f]  ;;  %v572_v62 = vrot.slane %v567_v59, 6  ;;  %vm3983_vm5 = vcmask 1048064   ;;  %v3068_v9 = vld [vmem:[%s3970_s1 + $0x108] sm:$0xff]  }
  0x42   : > { %431 = vst.msk [vmem:[#allocation3 + $0x10] sm:$0xff] %vm366_vm14, %v429_v50  ;;  %2829 = vmatpush3.bf16.msra.mxu1 %v3067_v55  ;;  %v573_v63 = vrot.slane %v568_v60, 6  ;;  %v3069_v15 = vld [vmem:[%s3970_s1 + $0x110] sm:$0xff]   ;;  %v3070_v18 = vld [vmem:[%s3970_s1 + $0x118] sm:$0xff]   ;;  %v641_v23 = vld [vmem:[#allocation3 + $0x48] sm:$0xff]  ;;  %vm1144_vm7 = vcmask 520192  }
  0x43   : > { %v608_v61 = vsel %vm3982_vm4, %v606_v57, %v607_v58  ;;  %v3071_v24 = vld [vmem:[%s3972_s3 + $0x80] sm:$0xff]   ;;  %v3072_v27 = vld [vmem:[%s3972_s3 + $0x88] sm:$0xff]   ;;  %v3080_v30 = vld [vmem:[%s3972_s3 + $0x50] sm:$0xff]   ;;  %vm1110_vm4 = vsmask.f32 7942  ;;  %vm1118_vm2 = vcmask 518145  }
  0x44   : > { %610 = vst.msk [vmem:[#allocation3 + $0x40] sm:$0xff] %vm366_vm14, %v608_v61  ;;  %v574_v2 = vsel %vm3984_vm12, %v572_v62, %v573_v63  ;;  %v3074_v25 = vld [vmem:[%s3972_s3 + $0x40] sm:$0xff]   ;;  %v3077_v28 = vld [vmem:[%s3972_s3 + $0x48] sm:$0xff]   ;;  %v3073_v31 = vld [vmem:[%s3972_s3 + $0x90] sm:$0xff]   ;;  %vm1138_vm12 = vcmask 523268  }
  0x45   : > { %576 = vst.msk [vmem:[#allocation3 + $0x38] sm:$0xff] %vm366_vm14, %v574_v2  ;;  %v3076_v26 = vld [vmem:[%s3972_s3] sm:$0xff]   ;;  %2848 = vmatprep.subr.bf16.mxu1 %v3074_v25  ;;  %v3079_v29 = vld [vmem:[%s3972_s3 + $0x8] sm:$0xff]   ;;  %v3082_v33 = vld [vmem:[%s3972_s3 + $0x10] sm:$0xff]   ;;  %vm1139_vm9 = vsmask.f32 7954 }
  0x46   : > { %v636_v19 = vld [vmem:[#allocation3 + $0x20] sm:$0xff]  ;;  %v3078_v37 = vld [vmem:[%s3972_s3 + $0xa0] sm:$0xff]   ;;  %v3081_v38 = vld [vmem:[%s3972_s3 + $0xa8] sm:$0xff]  }
  0x47   : > { %v3083_v34 = vld [vmem:[%s3972_s3 + $0x58] sm:$0xff]   ;;  %v3084_v39 = vld [vmem:[%s3972_s3 + $0xb0] sm:$0xff]   ;;  %v2657_v46 = vld [vmem:[%s3971_s2] ss:$0 sm:$0xff] }
  0x48   : > { %v3075_v35 = vld [vmem:[%s3972_s3 + $0x98] sm:$0xff]   ;;  %vm3572_vm15 = vmand %vm1138_vm12, %vm1139_vm9  ;;  %vm1699_vm12 = vcmask 516096  }
  0x49   : > { %v3085_v36 = vld [vmem:[%s3972_s3 + $0x18] sm:$0xff]  }
  0x9f   : > { %v419_v3 = vpop.permute.xlu0 %418 }
  0xa0   : > { %421 = vst.msk [vmem:[#allocation3 + $0x8] sm:$0xff] %vm3983_vm5, %v419_v3 }
  0xa1   : > { %v564_v4 = vpop.permute.xlu1 %563 }
  0xa2   : > { %566 = vst.msk [vmem:[#allocation3 + $0x30] sm:$0xff] %vm3983_vm5, %v564_v4 }
  0xa3   : > { %v384_v5 = vpop.permute.xlu0 %383 }
  0xa4   : > { %387 = vst.msk [vmem:[#allocation3] sm:$0xff] %vm3983_vm5, %v384_v5 }
  0xa6   : > { %v530_v6 = vpop.permute.xlu1 %529 }
  0xa7   : > { %532 = vst.msk [vmem:[#allocation3 + $0x28] sm:$0xff] %vm3983_vm5, %v530_v6  ;;  %v633_v7 = vld [vmem:[#allocation3 + $0x8] sm:$0xff] }
  0xa8   : > { %975 = vmatprep.mubr.bf16.mxu0 %v633_v7 }
  0xa9   : > { %v487_v8 = vpop.permute.xlu0 %486  ;;  %v638_v10 = vld [vmem:[#allocation3 + $0x30] sm:$0xff] }
  0xaa   : > { %489 = vst.msk [vmem:[#allocation3 + $0x18] sm:$0xff] %vm3983_vm5, %v487_v8 }
  0xab   : > { %v453_v11 = vpop.permute.xlu1 %452  ;;  %v632_v13 = vld [vmem:[#allocation3] sm:$0xff] }
  0xac   : > { %455 = vst.msk [vmem:[#allocation3 + $0x10] sm:$0xff] %vm3983_vm5, %v453_v11  ;;  %976 = vmatmul.mubr.bf16.vlgmr.msra.gmra.mrb[0].mxu0 %v632_v13 }
  0xad   : > { %2949 = vmatpush3.bf16.msra.mxu0 %v3065_v52  ;;  %983 = vmatprep.mubr.bf16.mxu0 %v638_v10  ;;  %v627_v14 = vpop.permute.xlu0 %626 }
  0xae   : > { %2950 = vmatprep.subr.bf16.mxu0 %v3068_v9  ;;  %629 = vst.msk [vmem:[#allocation3 + $0x40] sm:$0xff] %vm3983_vm5, %v627_v14  ;;  %v637_v17 = vld [vmem:[#allocation3 + $0x28] sm:$0xff] }
  0xb0   : > { %v598_v16 = vpop.permute.xlu1 %597 }
  0xb1   : > { %2951 = vmatpush3.bf16.msra.mxu0 %v3068_v9  ;;  %600 = vst.msk [vmem:[#allocation3 + $0x38] sm:$0xff] %vm3983_vm5, %v598_v16  ;;  %v635_v32 = vld [vmem:[#allocation3 + $0x18] sm:$0xff]  ;;  %vm3989_vm5 = vcmask 523265  }
  0xb2   : > { %2952 = vmatprep.subr.bf16.mxu0 %v3069_v15  ;;  %1024 = vmatprep.mubr.bf16.mxu1 %v635_v32  ;;  %vm3567_vm3 = vmand %vm3989_vm5, %vm1110_vm4 }
  0xb3   : > { %v634_v20 = vld [vmem:[#allocation3 + $0x10] sm:$0xff]  ;;  %vm1145_vm5 = vmand %vm1144_vm7, %vm468_vm0  ;;  %vm4010_vm7 = vcmask 1043456  }
  0xb4   : > { %1025 = vmatmul.mubr.bf16.vlgmr.msra.gmra.mrb[0].mxu1 %v634_v20  ;;  %984 = vmatmul.mubr.bf16.gmra.mrb[4].mxu0 %v637_v17 }
  0xb5   : > { %2953 = vmatpush3.bf16.msra.mxu0 %v3069_v15  ;;  %2956 = vmatprep.mubr.msk.bf16.mxu0 %vm366_vm14, %v636_v19  ;;  %v640_v21 = vld [vmem:[#allocation3 + $0x40] sm:$0xff] }
  0xb6   : > { %2954 = vmatprep.subr.bf16.mxu0 %v3070_v18  ;;  %1032 = vmatprep.mubr.bf16.mxu1 %v640_v21 }
  0xb7   : > { %2849 = vmatpush3.bf16.msra.mxu1 %v3076_v26 }
  0xb8   : > { %v639_v22 = vld [vmem:[#allocation3 + $0x38] sm:$0xff]  ;;  %2850 = vmatprep.subr.bf16.mxu1 %v3077_v28 }
  0xb9   : > { %2955 = vmatpush3.bf16.msra.mxu0 %v3070_v18 }
  0xba   : > { %1646 = vmatprep.subr.bf16.mxu0 %v3207_v0 }
  0xbb   : > { %2851 = vmatpush3.bf16.msra.mxu1 %v3079_v29 }
  0xbc   : > { %1033 = vmatmul.mubr.bf16.gmra.mrb[4].mxu1 %v639_v22  ;;  %2957 = vmatmul.mubr.msk.bf16.vlgmr.msra.gmra.mrb[8].mxu0 %vm366_vm14, %v641_v23 }
  0xbd   : > { %1647 = vmatpush1.bf16.msra.mxu0 %v3071_v24  ;;  %2852 = vmatprep.subr.bf16.mxu1 %v3080_v30  ;;  %v1112_v30 = vld [vmem:[#allocation2] sm:$0xfe] }
  0xbe   : > { %1648 = vmatprep.subr.bf16.mxu0 %v3207_v0 }
  0xbf   : > { %2853 = vmatpush3.bf16.msra.mxu1 %v3082_v33 }
  0xc0   : > { %2854 = vmatprep.subr.bf16.mxu1 %v3083_v34 }
  0xc1   : > { %1649 = vmatpush1.bf16.msra.mxu0 %v3072_v27 }
  0xc2   : > { %1650 = vmatprep.subr.bf16.mxu0 %v3207_v0 }
  0xc3   : > { %2855 = vmatpush3.bf16.msra.mxu1 %v3085_v36 }
  0xc5   : > { %1651 = vmatpush1.bf16.msra.mxu0 %v3073_v31  ;;  %v1115_v31 = vld [vmem:[#allocation2 + $0x8] sm:$0x3] }
  0xc6   : > { %1652 = vmatprep.subr.bf16.mxu0 %v3207_v0 }
  0xc9   : > { %1653 = vmatpush1.bf16.msra.mxu0 %v3075_v35 }
  0xca   : > { %1654 = vmatprep.subr.bf16.mxu0 %v3207_v0 }
  0xcd   : > { %1655 = vmatpush1.bf16.msra.mxu0 %v3078_v37 }
  0xce   : > { %1656 = vmatprep.subr.bf16.mxu0 %v3207_v0 }
  0xd1   : > { %1657 = vmatpush1.bf16.msra.mxu0 %v3081_v38 }
  0xd2   : > { %1658 = vmatprep.subr.bf16.mxu0 %v3207_v0 }
  0xd5   : > { %1659 = vmatpush1.bf16.msra.mxu0 %v3084_v39 }
  0xd6   : > { %1660 = vmatprep.subr.bf16.mxu0 %v3207_v0 }
 0x17f   : > { %v2802_v40 = vpop.f32.mrb[0].mxu0 }
 0x180   : > { %v2803_v41 = vpop.f32.mrb[1].mxu0 }
 0x181   : > { %v2804_v42 = vadd.f32 %v2803_v41, %v2802_v40  ;;  %v2805_v43 = vpop.f32.mrb[2].mxu0  ;;  %v1141_v41 = vld [vmem:[#allocation2 + $0x8] sm:$0xf0] }
 0x182   : > { %v2806_v44 = vpop.f32.mrb[3].mxu0 }
 0x183   : > { %v2807_v45 = vadd.f32 %v2806_v44, %v2805_v43  ;;  %v978_v51 = vadd.f32 %v2804_v42, %v2657_v46  ;;  %v1146_v42 = vld [vmem:[#allocation2 + $0x10] sm:$0x1f]  ;;  %v3086_v44 = vld [vmem:[%s3972_s3 + $0x60] sm:$0xff]  }
 0x184   : > { %2856 = vmatprep.subr.bf16.mxu1 %v3086_v44 }
 0x185   : > { %v981_v58 = vadd.f32 %v2807_v45, %v2657_v46  ;;  %v3087_v45 = vld [vmem:[%s3972_s3 + $0xb8] sm:$0xff]   ;;  %2857 = vmatpush3.bf16.msra.mxu1 %v3088_v12  ;;  %v3094_v12 = vld [vmem:[%s3972_s3 + $0x30] sm:$0xff]  }
 0x186   : > { %1661 = vmatpush1.bf16.msra.mxu0 %v3087_v45  ;;  %v3093_v45 = vld [vmem:[%s3972_s3 + $0xc8] sm:$0xff]  }
 0x187   : > { %v2830_v47 = vpop.f32.mrb[0].mxu1  ;;  %v2808_v48 = vpop.f32.mrb[4].mxu0  ;;  %1662 = vmatprep.subr.bf16.mxu0 %v3207_v0 }
 0x188   : > { %v2831_v49 = vpop.f32.mrb[1].mxu1  ;;  %v2809_v50 = vpop.f32.mrb[5].mxu0 }
 0x189   : > { %v2832_v52 = vadd.f32 %v2831_v49, %v2830_v47  ;;  %v2833_v54 = vpop.f32.mrb[2].mxu1  ;;  %v2810_v55 = vadd.f32 %v2809_v50, %v2808_v48  ;;  %v2811_v56 = vpop.f32.mrb[6].mxu0  ;;  %v3089_v48 = vld [vmem:[%s3972_s3 + $0x68] sm:$0xff]   ;;  %v3090_v49 = vld [vmem:[%s3972_s3 + $0xc0] sm:$0xff]  }
 0x18a   : > { %v2834_v53 = vpop.f32.mrb[3].mxu1  ;;  %v2812_v57 = vpop.f32.mrb[7].mxu0  ;;  %2858 = vmatprep.subr.bf16.mxu1 %v3089_v48  ;;  %1663 = vmatpush1.bf16.msra.mxu0 %v3090_v49 }
 0x18b   : > { %v2835_v59 = vadd.f32 %v2834_v53, %v2833_v54  ;;  %v2813_v60 = vadd.f32 %v2812_v57, %v2811_v56  ;;  %v1027_v61 = vadd.f32 %v2832_v52, %v978_v51  ;;  %v986_v5 = vadd.f32 %v2810_v55, %v2657_v46  ;;  %v3091_v51 = vld [vmem:[%s3972_s3 + $0x28] sm:$0xff]   ;;  %1664 = vmatprep.subr.bf16.mxu0 %v3207_v0 }
 0x18c   : > { %2859 = vmatpush3.bf16.msra.mxu1 %v3091_v51 }
 0x18d   : > { %v1030_v62 = vadd.f32 %v2835_v59, %v981_v58  ;;  %v989_v13 = vadd.f32 %v2813_v60, %v2657_v46 }
 0x18e   : > { %1665 = vmatpush1.bf16.msra.mxu0 %v3093_v45 }
 0x18f   : > { %v2836_v63 = vpop.f32.mrb[4].mxu1  ;;  %v2958_v2 = vpop.f32.mrb[8].mxu0  ;;  %1666 = vmatprep.subr.bf16.mxu0 %v3207_v0 }
 0x190   : > { %v2837_v3 = vpop.f32.mrb[5].mxu1  ;;  %v1075_v4 = vpop.f32.mrb[9].mxu0 }
 0x191   : > { %v2838_v6 = vadd.f32 %v2837_v3, %v2836_v63  ;;  %v2839_v7 = vpop.f32.mrb[6].mxu1  ;;  %v1076_v8 = vadd.f32 %v1075_v4, %v1027_v61  ;;  %v2959_v9 = vpop.f32.mrb[10].mxu0 }
 0x192   : > { %v2840_v10 = vpop.f32.mrb[7].mxu1  ;;  %v1078_v11 = vpop.f32.mrb[11].mxu0 }
 0x193   : > { %v2841_v14 = vadd.f32 %v2840_v10, %v2839_v7  ;;  %v1035_v15 = vadd.f32 %v2838_v6, %v986_v5  ;;  %v1079_v16 = vadd.f32 %v1078_v11, %v1030_v62  ;;  %v1090_v32 = vmax.f32 %v1076_v8, 0.0 }
 0x195   : > { %v1084_v17 = vadd.f32 %v2958_v2, %v1035_v15  ;;  %v1038_v18 = vadd.f32 %v2841_v14, %v989_v13  ;;  %v1091_v19 = vmax.f32 %v1079_v16, 0.0 }
 0x197   : > { %v1087_v20 = vadd.f32 %v2959_v9, %v1038_v18  ;;  %v1099_v21 = vpack.c.bf16 %v1091_v19, %v1090_v32  ;;  %v1092_v22 = vmax.f32 %v1084_v17, 0.0 }
 0x199   : > { %v1093_v23 = vmax.f32 %v1087_v20, 0.0  ;;  %v1101_v24 = vshrl.u32 %v1099_v21, 16  ;;  %v1104_v25 = vshll.u32 %v1099_v21, 16 }
 0x19b   : > { %v1128_v26 = vpack.c.bf16 %v1093_v23, %v1092_v22  ;;  %v1103_v27 = vrot.slane %v1101_v24, 6  ;;  %v1106_v28 = vrot.slane %v1104_v25, 7 }
 0x19d   : > { %v1130_v33 = vshrl.u32 %v1128_v26, 16  ;;  %v1133_v34 = vshll.u32 %v1128_v26, 16  ;;  %v1107_v35 = vor.u32 %v1106_v28, %v1103_v27 }
 0x19f   : > { %v1132_v36 = vrot.slane %v1130_v33, 3  ;;  %v1135_v37 = vrot.slane %v1133_v34, 4  ;;  %v1113_v39 = vsel %vm3567_vm3, %v1107_v35, %v1112_v30  ;;  %v1116_v40 = vsel %vm3336_vm10, %v1107_v35, %v1115_v31  ;;  %vm3599_vm10 = vmand %vm1118_vm2, %vm1110_vm4  ;;  %v3092_v35 = vld [vmem:[%s3972_s3 + $0x70] sm:$0xff]  }
 0x1a0   : > { %1117 = vst [vmem:[#allocation2 + $0x8] sm:$0x3] %v1116_v40  ;;  %1114 = vst [vmem:[#allocation2] sm:$0xfe] %v1113_v39  ;;  %2860 = vmatprep.subr.bf16.mxu1 %v3092_v35  ;;  %vm4009_vm2 = vcmask 1046528   ;;  %vm4012_vm3 = vcmask 1042432  }
 0x1a1   : > { %v1136_v43 = vor.u32 %v1135_v37, %v1132_v36  ;;  %2861 = vmatpush3.bf16.msra.mxu1 %v3094_v12 }
 0x1a3   : > { %v1142_v46 = vsel %vm3572_vm15, %v1136_v43, %v1141_v41  ;;  %v1147_v47 = vsel %vm1145_vm5, %v1136_v43, %v1146_v42  ;;  %vm3614_vm15 = vmand %vm354_vm1, %vm1139_vm9  ;;  %vm4007_vm1 = vsmask.f32 5376  ;;  %vm4008_vm9 = vsmask.f32 3328 }
 0x1a4   : > { %1148 = vst [vmem:[#allocation2 + $0x10] sm:$0x1f] %v1147_v47  ;;  %1143 = vst [vmem:[#allocation2 + $0x8] sm:$0xf0] %v1142_v46  ;;  %v3095_v46 = vld [vmem:[%s3972_s3 + $0x78] sm:$0xff]   ;;  %vm4011_vm5 = vcmask 1045504  }
 0x1a5   : > { %2862 = vmatprep.subr.bf16.mxu1 %v3095_v46 }
 0x1a7   : > { %v1120_v52 = vld [vmem:[#allocation2 + $0x8] sm:$0x6]  ;;  %v1156_v54 = vld [vmem:[#allocation2] sm:$0xff]  ;;  %v1157_v55 = vld [vmem:[#allocation2 + $0x8] sm:$0x1] }
 0x1a8   : > { %v1121_v56 = vsel %vm3599_vm10, 0, %v1120_v52  ;;  %v1161_v53 = vshll.u32 %v1156_v54, 16  ;;  %v1166_v57 = vshll.u32 %v1157_v55, 16  ;;  %v1183_v58 = vld [vmem:[#allocation2] sm:$0xfe]  ;;  %1155 = vst.msk [vmem:[#allocation3] sm:$0xff] %vm366_vm14, %v1156_v54 }
 0x1a9   : > { %1700 = vst.msk [vmem:[#allocation2] sm:$0x1] %vm1699_vm12, %v3207_v0  ;;  %1122 = vst [vmem:[#allocation2 + $0x8] sm:$0x6] %v1121_v56  ;;  %v1186_v60 = vshrl.u32 %v1183_v58, 16  ;;  %v1189_v61 = vshll.u32 %v1183_v58, 16 }
 0x1aa   : > { %v1238_v62 = vld [vmem:[#allocation2] sm:$0xf8]  ;;  %v1159_v2 = vshrl.u32 %v1156_v54, 16  ;;  %v1163_v3 = vrot.slane %v1161_v53, 1  ;;  %v1168_v6 = vrot.slane %v1166_v57, 1 }
 0x1ab   : > { %v1215_v63 = vld [vmem:[#allocation2] sm:$0xfc]  ;;  %v1151_v5 = vld [vmem:[#allocation2 + $0x10] sm:$0x30]  ;;  %v1288_v7 = vld [vmem:[#allocation2 + $0x8] sm:$0xf0] }
 0x1ac   : > { %v1218_v4 = vshrl.u32 %v1215_v63, 16  ;;  %v1242_v8 = vrot.slane %v1238_v62, 3  ;;  %v1152_v9 = vsel %vm3614_vm15, 0, %v1151_v5  ;;  %v1164_v10 = vor.u32 %v1163_v3, %v1159_v2  ;;  %v1320_v14 = vld [vmem:[#allocation2 + $0x8] sm:$0xe0] }
 0x1ad   : > { %v1291_v11 = vshrl.u32 %v1288_v7, 16  ;;  %v1294_v13 = vshll.u32 %v1288_v7, 16  ;;  %1153 = vst [vmem:[#allocation2 + $0x10] sm:$0x30] %v1152_v9  ;;  %v3621_v15 = vrot.slane %v1186_v60, 1  ;;  %v1191_v16 = vrot.slane %v1189_v61, 2 }
 0x1ae   : > { %v1221_v17 = vshll.u32 %v1215_v63, 16  ;;  %v1323_v32 = vshrl.u32 %v1320_v14, 16  ;;  %v1256_v18 = vld [vmem:[#allocation2 + $0x8] sm:$0xf8]  ;;  %v1169_v19 = vsel %vm370_vm13, %v1164_v10, %v1168_v6  ;;  %v3626_v21 = vrot.slane %v1218_v4, 2  ;;  %v3096_v61 = vld [vmem:[%s3972_s3 + $0xd0] sm:$0xff]  }
 0x1af   : > { %v3624_v20 = vrot.slane %v1291_v11, 4  ;;  %v1326_v22 = vshll.u32 %v1320_v14, 16  ;;  %1170 = vrot.lane.b32.xlu1 %v1169_v19, %s3208_s22  ;;  %v3629_v23 = vrot.slane %v1294_v13, 5  ;;  %v1259_v25 = vshrl.u32 %v1256_v18, 16  ;;  %v1257_v39 = vld [vmem:[#allocation2 + $0x10] sm:$0xf]  ;;  %1667 = vmatpush1.bf16.msra.mxu0 %v3096_v61 }
 0x1b0   : > { %v3631_v24 = vrot.slane %v1221_v17, 3  ;;  %v1262_v26 = vshll.u32 %v1256_v18, 16  ;;  %v1184_v27 = vld [vmem:[#allocation2 + $0x8] sm:$0x3]  ;;  %v3633_v34 = vrot.slane %v1323_v32, 5  ;;  %v1192_v47 = vor.u32 %v1191_v16, %v3621_v15  ;;  %v3097_v11 = vld [vmem:[%s3972_s3 + $0x38] sm:$0xff]   ;;  %1668 = vmatprep.subr.bf16.mxu0 %v3207_v0 }
 0x1b1   : > { %v1239_v28 = vld [vmem:[#allocation2 + $0x8] sm:$0x7]  ;;  %v1194_v30 = vshrl.u32 %v1184_v27, 16  ;;  %v1197_v31 = vshll.u32 %v1184_v27, 16  ;;  %v3638_v38 = vrot.slane %v1326_v22, 6  ;;  %v3640_v40 = vrot.slane %v1259_v25, 3  ;;  %2863 = vmatpush3.bf16.msra.mxu1 %v3097_v11 }
 0x1b2   : > { %v1216_v29 = vld [vmem:[#allocation2 + $0x8] sm:$0x7]  ;;  %v1243_v33 = vrot.slane %v1239_v28, 3  ;;  %v3643_v44 = vrot.slane %v1262_v26, 4  ;;  %v1297_v49 = vor.u32 %v3629_v23, %v3624_v20  ;;  %v1174_v55 = vld [vmem:[#allocation2] sm:$0xfe]  ;;  %v1224_v62 = vor.u32 %v3631_v24, %v3626_v21 }
 0x1b3   : > { %v1226_v36 = vshrl.u32 %v1216_v29, 16  ;;  %v1229_v37 = vshll.u32 %v1216_v29, 16  ;;  %v1196_v41 = vrot.slane %v1194_v30, 1  ;;  %v1199_v42 = vrot.slane %v1197_v31, 2  ;;  %v1175_v54 = vld [vmem:[#allocation2 + $0x8] sm:$0x1] }
 0x1b4   : > { %v1244_v43 = vsel %vm460_vm8, %v1242_v8, %v1243_v33  ;;  %v1289_v48 = vld [vmem:[#allocation2 + $0x10] sm:$0x1f]  ;;  %v1279_v56 = vld [vmem:[#allocation2 + $0x8] sm:$0xf0]  ;;  %v1267_v3 = vshrl.u32 %v1257_v39, 16  ;;  %v1265_v14 = vor.u32 %v3643_v44, %v3640_v40  ;;  %v1270_v16 = vshll.u32 %v1257_v39, 16 }
 0x1b5   : > { %1246 = vst.msk [vmem:[#allocation3 + $0x18] sm:$0xff] %vm366_vm14, %v1244_v43  ;;  %v1228_v50 = vrot.slane %v1226_v36, 2  ;;  %v1231_v51 = vrot.slane %v1229_v37, 3  ;;  %v1321_v52 = vld [vmem:[#allocation2 + $0x10] sm:$0x3f]  ;;  %v1200_v53 = vor.u32 %v1199_v42, %v1196_v41  ;;  %v1299_v57 = vshrl.u32 %v1289_v48, 16 }
 0x1b6   : > { %v1302_v58 = vshll.u32 %v1289_v48, 16  ;;  %v1331_v59 = vshrl.u32 %v1321_v52, 16  ;;  %v1280_v60 = vld [vmem:[#allocation2 + $0x10] sm:$0xf]  ;;  %v1334_v2 = vshll.u32 %v1321_v52, 16  ;;  %v1269_v15 = vrot.slane %v1267_v3, 3 }
 0x1b7   : > { %v1232_v63 = vor.u32 %v1231_v51, %v1228_v50  ;;  %v1206_v4 = vld [vmem:[#allocation2] sm:$0xfc]  ;;  %v1207_v5 = vld [vmem:[#allocation2 + $0x8] sm:$0x3]  ;;  %v1201_v6 = vsel %vm400_vm11, %v1192_v47, %v1200_v53  ;;  %v1301_v7 = vrot.slane %v1299_v57, 4  ;;  %v1179_v18 = vrot.slane %v1175_v54, 1 }
 0x1b8   : > { %v1304_v8 = vrot.slane %v1302_v58, 5  ;;  %v1333_v9 = vrot.slane %v1331_v59, 5  ;;  %v1311_v10 = vld [vmem:[#allocation2 + $0x8] sm:$0xe0]  ;;  %1202 = vrot.lane.b32.xlu0 %v1201_v6, %s3208_s22  ;;  %v1336_v13 = vrot.slane %v1334_v2, 6  ;;  %v1178_v19 = vrot.slane %v1174_v55, 1 }
 0x1b9   : > { %v1312_v17 = vld [vmem:[#allocation2 + $0x10] sm:$0x1f]  ;;  %v1283_v20 = vrot.slane %v1279_v56, 4  ;;  %v1247_v21 = vld [vmem:[#allocation2 + $0x8] sm:$0xf8]  ;;  %v3098_v22 = vld [vmem:[%s3972_s3 + $0xd8] sm:$0xff]   ;;  %v1233_v23 = vsel %vm4007_vm1, %v1224_v62, %v1232_v63  ;;  %v1329_v42 = vor.u32 %v3638_v38, %v3633_v34 }
 0x1ba   : > { %v1305_v32 = vor.u32 %v1304_v8, %v1301_v7  ;;  %v1272_v24 = vrot.slane %v1270_v16, 4  ;;  %v1284_v25 = vrot.slane %v1280_v60, 4  ;;  %v1210_v26 = vrot.slane %v1206_v4, 2  ;;  %v1248_v27 = vld [vmem:[#allocation2 + $0x10] sm:$0x7]  ;;  %1669 = vmatpush1.bf16.msra.mxu0 %v3098_v22  ;;  %v3099_v63 = vld [vmem:[%s3974_s5 + $0x80] sm:$0xff]  }
 0x1bb   : > { %v1337_v30 = vor.u32 %v1336_v13, %v1333_v9  ;;  %v1180_v31 = vsel %vm4009_vm2, %v1178_v19, %v1179_v18  ;;  %v1211_v33 = vrot.slane %v1207_v5, 2  ;;  %v1343_v35 = vld [vmem:[#allocation2 + $0x8] sm:$0xc0]  ;;  %v1344_v36 = vld [vmem:[#allocation2 + $0x10] sm:$0x3f]  ;;  %v1315_v40 = vrot.slane %v1311_v10, 5  ;;  %2960 = vmatprep.subr.bf16.mxu0 %v3099_v63 }
 0x1bc   : > { %v1306_v28 = vsel %vm4008_vm9, %v1297_v49, %v1305_v32  ;;  %v1355_v29 = vld [vmem:[#allocation3 + $0x18] sm:$0xff]  ;;  %v1273_v37 = vor.u32 %v1272_v24, %v1269_v15  ;;  %1182 = vst.msk [vmem:[#allocation3 + $0x8] sm:$0xff] %vm366_vm14, %v1180_v31  ;;  %v1285_v39 = vsel %vm4010_vm7, %v1283_v20, %v1284_v25  ;;  %v1316_v41 = vrot.slane %v1312_v17, 5  ;;  %1234 = vrot.lane.b32.xlu0 %v1233_v23, %s3208_s22  ;;  %v3100_v2 = vld [vmem:[%s3974_s5 + $0x88] sm:$0xff]   ;;  %v3102_v4 = vld [vmem:[%s3974_s5 + $0x98] sm:$0xff]  }
 0x1bd   : > { %1307 = vrot.lane.b32.xlu1 %v1306_v28, %s3208_s22  ;;  %2725 = vmatprep.mubr.msk.bf16.mxu0 %vm366_vm14, %v1355_v29  ;;  %1287 = vst.msk [vmem:[#allocation3 + $0x30] sm:$0xff] %vm366_vm14, %v1285_v39  ;;  %v1212_v43 = vsel %vm4011_vm5, %v1210_v26, %v1211_v33  ;;  %v1251_v44 = vrot.slane %v1247_v21, 3  ;;  %v1252_v45 = vrot.slane %v1248_v27, 3  ;;  %v1347_v46 = vrot.slane %v1343_v35, 6  ;;  %v3101_v3 = vld [vmem:[%s3974_s5 + $0x90] sm:$0xff]   ;;  %v3103_v5 = vld [vmem:[%s3974_s5 + $0x40] sm:$0xff]  }
 0x1be   : > { %1214 = vst.msk [vmem:[#allocation3 + $0x10] sm:$0xff] %vm366_vm14, %v1212_v43  ;;  %v1317_v12 = vsel %vm4012_vm3, %v1315_v40, %v1316_v41  ;;  %v1348_v47 = vrot.slane %v1344_v36, 6  ;;  %vm4013_vm10 = vsmask.f32 2304  ;;  %v1274_v34 = vsel %vm468_vm0, %v1265_v14, %v1273_v37  ;;  %v3104_v6 = vld [vmem:[%s3974_s5] sm:$0xff]   ;;  %v3105_v7 = vld [vmem:[%s3974_s5 + $0x48] sm:$0xff]   ;;  %2876 = vmatprep.subr.bf16.mxu1 %v3103_v5 }
 0x1bf   : > { %v1338_v48 = vsel %vm4013_vm10, %v1329_v42, %v1337_v30  ;;  %1319 = vst.msk [vmem:[#allocation3 + $0x38] sm:$0xff] %vm366_vm14, %v1317_v12  ;;  %v1253_v49 = vsel %vm460_vm8, %v1251_v44, %v1252_v45  ;;  %vm4014_vm15 = vcmask 1041408   ;;  %vm4015_vm1 = vcmask 1048064   ;;  %v3106_v8 = vld [vmem:[%s3974_s5 + $0x8] sm:$0xff]   ;;  %v3108_v9 = vld [vmem:[%s3974_s5 + $0x10] sm:$0xff]   ;;  %v3109_v10 = vld [vmem:[%s3974_s5 + $0x58] sm:$0xff]  }
 0x1c0   : > { %1255 = vst.msk [vmem:[#allocation3 + $0x28] sm:$0xff] %vm366_vm14, %v1253_v49  ;;  %v1349_v38 = vsel %vm4014_vm15, %v1347_v46, %v1348_v47  ;;  %1275 = vrot.lane.b32.xlu0 %v1274_v34, %s3208_s22  ;;  %vm4016_vm9 = vmmov %vm4015_vm1  ;;  %vm1708_vm10 = vcmask 517121   ;;  %vm1720_vm15 = vcmask 519171   ;;  %v3110_v11 = vld [vmem:[%s3974_s5 + $0x18] sm:$0xff]   ;;  %v3111_v13 = vld [vmem:[%s3974_s5 + $0x60] sm:$0xff]  }
 0x1c1   : > { %1339 = vrot.lane.b32.xlu1 %v1338_v48, %s3208_s22  ;;  %1351 = vst.msk [vmem:[#allocation3 + $0x40] sm:$0xff] %vm366_vm14, %v1349_v38  ;;  %vm4017_vm2 = vmmov %vm4015_vm1  ;;  %v3112_v14 = vld [vmem:[%s3974_s5 + $0x20] sm:$0xff]   ;;  %v3113_v15 = vld [vmem:[%s3974_s5 + $0x68] sm:$0xff]  }
 0x1c2   : > { %vm4018_vm7 = vmmov %vm4015_vm1  ;;  %1709 = vst.msk [vmem:[#allocation2 + $0x8] sm:$0x2] %vm1708_vm10, %v3207_v0  ;;  %v3114_v16 = vld [vmem:[%s3974_s5 + $0x28] sm:$0xff]   ;;  %v2696_v18 = vld [vmem:[%s3973_s4] ss:$0 sm:$0xff]  ;;  %vm4025_vm10 = vcmask 1045504  }
 0x1c3   : > { %vm4019_vm5 = vmmov %vm4015_vm1  ;;  %1721 = vst.msk [vmem:[#allocation2 + $0x10] sm:$0x8] %vm1720_vm15, %v3207_v0  ;;  %vm4026_vm15 = vcmask 1046528  }
 0x1c4   : > { %vm4020_vm3 = vmmov %vm4015_vm1 }
 0x1c8   : > { %v1359_v60 = vld [vmem:[#allocation3 + $0x40] sm:$0xff] }
 0x221   : > { %v1171_v50 = vpop.permute.xlu1 %1170 }
 0x222   : > { %1173 = vst.msk [vmem:[#allocation3] sm:$0xff] %vm4015_vm1, %v1171_v50  ;;  %vm1710_vm1 = vcmask 518146  }
 0x223   : > { %1711 = vst.msk [vmem:[#allocation2 + $0x8] sm:$0x4] %vm1710_vm1, %v3207_v0  ;;  %v3107_v0 = vld [vmem:[%s3974_s5 + $0x50] sm:$0xff]   ;;  %vm4027_vm1 = vcmask 1043456  }
 0x229   : > { %v1352_v57 = vld [vmem:[#allocation3] sm:$0xff] }
 0x22a   : > { %v1203_v51 = vpop.permute.xlu0 %1202 }
 0x22b   : > { %1205 = vst.msk [vmem:[#allocation3 + $0x8] sm:$0xff] %vm4016_vm9, %v1203_v51  ;;  %vm4021_vm9 = vcmask 523265   ;;  %v2138_v51 = vld [vmem:[#allocation2] sm:$0x1] }
 0x22e   : > { %v1235_v54 = vpop.permute.xlu0 %1234 }
 0x22f   : > { %v1308_v52 = vpop.permute.xlu1 %1307  ;;  %1237 = vst.msk [vmem:[#allocation3 + $0x10] sm:$0xff] %vm4018_vm7, %v1235_v54  ;;  %v3116_v54 = vld [vmem:[%s3974_s5 + $0x30] sm:$0xff]   ;;  %vm4022_vm7 = vsmask.f32 1280 }
 0x230   : > { %1310 = vst.msk [vmem:[#allocation3 + $0x30] sm:$0xff] %vm4017_vm2, %v1308_v52  ;;  %vm2164_vm2 = vcmask 1041409   ;;  %v3115_v52 = vld [vmem:[%s3974_s5 + $0x70] sm:$0xff]  }
 0x232   : > { %v1353_v56 = vld [vmem:[#allocation3 + $0x8] sm:$0xff]  ;;  %v1276_v53 = vpop.permute.xlu0 %1275 }
 0x233   : > { %v1340_v55 = vpop.permute.xlu1 %1339  ;;  %1629 = vmatprep.mubr.bf16.mxu1 %v1353_v56  ;;  %1278 = vst.msk [vmem:[#allocation3 + $0x28] sm:$0xff] %vm4020_vm3, %v1276_v53  ;;  %vm1718_vm3 = vcmask 518144  }
 0x234   : > { %1342 = vst.msk [vmem:[#allocation3 + $0x38] sm:$0xff] %vm4019_vm5, %v1340_v55  ;;  %1630 = vmatmul.mubr.bf16.vlgmr.msra.gmra.mrb[8].mxu1 %v1352_v57  ;;  %v3117_v55 = vld [vmem:[%s3974_s5 + $0x78] sm:$0xff]   ;;  %v2166_v57 = vld [vmem:[#allocation2 + $0x8] sm:$0x2]  ;;  %vm1716_vm5 = vcmask 523267  }
 0x235   : > { %2877 = vmatpush3.bf16.msra.mxu1 %v3104_v6 }
 0x236   : > { %v1354_v59 = vld [vmem:[#allocation3 + $0x10] sm:$0xff]  ;;  %2878 = vmatprep.subr.bf16.mxu1 %v3105_v7 }
 0x237   : > { %v1357_v58 = vld [vmem:[#allocation3 + $0x30] sm:$0xff]  ;;  %1679 = vmatmul.mubr.bf16.vlgmr.msra.gmra.mrb[12].mxu0 %v1354_v59 }
 0x238   : > { %1637 = vmatprep.mubr.bf16.mxu1 %v1357_v58  ;;  %2726 = vmatprep.mubr.msk.bf16.mxu0 %vm366_vm14, %v1359_v60  ;;  %v2139_v58 = vsel %vm3320_vm6, 0, %v2138_v51  ;;  %v3118_v60 = vld [vmem:[%s3974_s5 + $0x38] sm:$0xff]  }
 0x239   : > { %2961 = vmatpush3.bf16.msra.mxu0 %v3099_v63  ;;  %2879 = vmatpush3.bf16.msra.mxu1 %v3106_v8 }
 0x23a   : > { %v1356_v61 = vld [vmem:[#allocation3 + $0x28] sm:$0xff]  ;;  %2962 = vmatprep.subr.bf16.mxu0 %v3100_v2  ;;  %2880 = vmatprep.subr.bf16.mxu1 %v3107_v0 }
 0x23b   : > { %v1358_v62 = vld [vmem:[#allocation3 + $0x38] sm:$0xff] }
 0x23c   : > { %1638 = vmatmul.mubr.bf16.gmra.mrb[12].mxu1 %v1356_v61 }
 0x23d   : > { %2963 = vmatpush3.bf16.msra.mxu0 %v3100_v2  ;;  %2881 = vmatpush3.bf16.msra.mxu1 %v3108_v9 }
 0x23e   : > { %2964 = vmatprep.subr.bf16.mxu0 %v3101_v3  ;;  %2882 = vmatprep.subr.bf16.mxu1 %v3109_v10 }
 0x23f   : > { %1687 = vmatmul.mubr.bf16.gmra.mrb[16].mxu0 %v1358_v62 }
 0x241   : > { %2965 = vmatpush3.bf16.msra.mxu0 %v3101_v3  ;;  %2883 = vmatpush3.bf16.msra.mxu1 %v3110_v11 }
 0x242   : > { %2966 = vmatprep.subr.bf16.mxu0 %v3102_v4  ;;  %2884 = vmatprep.subr.bf16.mxu1 %v3111_v13 }
 0x245   : > { %2967 = vmatpush3.bf16.msra.mxu0 %v3102_v4  ;;  %2885 = vmatpush3.bf16.msra.mxu1 %v3112_v14 }
 0x246   : > { %2886 = vmatprep.subr.bf16.mxu1 %v3113_v15 }
 0x249   : > { %2887 = vmatpush3.bf16.msra.mxu1 %v3114_v16 }
 0x24a   : > { %2888 = vmatprep.subr.bf16.mxu1 %v3115_v52 }
 0x24d   : > { %2889 = vmatpush3.bf16.msra.mxu1 %v3116_v54 }
 0x24e   : > { %2890 = vmatprep.subr.bf16.mxu1 %v3117_v55 }
 0x251   : > { %2891 = vmatpush3.bf16.msra.mxu1 %v3118_v60 }
 0x307   : > { %v2864_v17 = vpop.f32.mrb[8].mxu1 }
 0x308   : > { %v2865_v32 = vpop.f32.mrb[9].mxu1 }
 0x309   : > { %v2866_v19 = vadd.f32 %v2865_v32, %v2864_v17  ;;  %v2867_v20 = vpop.f32.mrb[10].mxu1 }
 0x30a   : > { %v2868_v21 = vpop.f32.mrb[11].mxu1  ;;  %v1680_v24 = vpop.f32.mrb[12].mxu0 }
 0x30b   : > { %v2869_v22 = vadd.f32 %v2868_v21, %v2867_v20  ;;  %v1632_v23 = vadd.f32 %v2866_v19, %v2696_v18  ;;  %v1682_v25 = vpop.f32.mrb[13].mxu0 }
 0x30c   : > { %v1683_v28 = vpop.f32.mrb[14].mxu0 }
 0x30d   : > { %v1681_v26 = vadd.f32 %v1680_v24, %v1632_v23  ;;  %v1635_v27 = vadd.f32 %v2869_v22, %v2696_v18  ;;  %v1685_v29 = vpop.f32.mrb[15].mxu0 }
 0x30f   : > { %v1684_v30 = vadd.f32 %v1683_v28, %v1635_v27  ;;  %v2870_v31 = vpop.f32.mrb[12].mxu1  ;;  %v1695_v35 = vmax.f32 %v1681_v26, 0.0 }
 0x310   : > { %v2871_v33 = vpop.f32.mrb[13].mxu1 }
 0x311   : > { %v1696_v36 = vmax.f32 %v1684_v30, 0.0  ;;  %v2872_v37 = vadd.f32 %v2871_v33, %v2870_v31  ;;  %v2873_v39 = vpop.f32.mrb[14].mxu1 }
 0x312   : > { %v2874_v40 = vpop.f32.mrb[15].mxu1  ;;  %v1688_v44 = vpop.f32.mrb[16].mxu0 }
 0x313   : > { %v1701_v41 = vpack.c.bf16 %v1696_v36, %v1695_v35  ;;  %v2875_v42 = vadd.f32 %v2874_v40, %v2873_v39  ;;  %v1640_v43 = vadd.f32 %v2872_v37, %v2696_v18  ;;  %v1690_v45 = vpop.f32.mrb[17].mxu0 }
 0x314   : > { %v1691_v48 = vpop.f32.mrb[18].mxu0 }
 0x315   : > { %v1703_v12 = vrot.slane %v1701_v41, 7  ;;  %v1689_v46 = vadd.f32 %v1688_v44, %v1640_v43  ;;  %v1643_v47 = vadd.f32 %v2875_v42, %v2696_v18  ;;  %v1693_v49 = vpop.f32.mrb[19].mxu0 }
 0x317   : > { %1706 = vst.msk [vmem:[#allocation2] sm:$0xfe] %vm4021_vm9, %v1703_v12  ;;  %v1692_v34 = vadd.f32 %v1691_v48, %v1643_v47  ;;  %v1697_v38 = vmax.f32 %v1689_v46, 0.0  ;;  %vm4028_vm9 = vsmask.f32 5376 }
 0x318   : > { %1707 = vst.msk [vmem:[#allocation2 + $0x8] sm:$0x1] %vm1699_vm12, %v1703_v12  ;;  %vm3772_vm12 = vmand %vm2164_vm2, %vm4022_vm7 }
 0x319   : > { %v1698_v50 = vmax.f32 %v1692_v34, 0.0  ;;  %v2167_v63 = vsel %vm3772_vm12, 0, %v2166_v57  ;;  %vm4029_vm7 = vmmov %vm4025_vm10 }
 0x31b   : > { %v1712_v53 = vpack.c.bf16 %v1698_v50, %v1697_v38 }
 0x31d   : > { %v1714_v59 = vrot.slane %v1712_v53, 5 }
 0x31e   : > { %v1751_v61 = vld [vmem:[#allocation2] sm:$0xfe] }
 0x31f   : > { %v1752_v62 = vld [vmem:[#allocation2 + $0x8] sm:$0x3]  ;;  %v1724_v2 = vld [vmem:[#allocation2] sm:$0xff]  ;;  %v1754_v3 = vshrl.u32 %v1751_v61, 16  ;;  %v1757_v4 = vshll.u32 %v1751_v61, 16 }
 0x320   : > { %v1762_v5 = vshrl.u32 %v1752_v62, 16  ;;  %v1765_v6 = vshll.u32 %v1752_v62, 16  ;;  %v1725_v7 = vld [vmem:[#allocation2 + $0x8] sm:$0x1]  ;;  %1717 = vst.msk [vmem:[#allocation2 + $0x8] sm:$0xf8] %vm1716_vm5, %v1714_v59 }
 0x321   : > { %1719 = vst.msk [vmem:[#allocation2 + $0x10] sm:$0x7] %vm1718_vm3, %v1714_v59  ;;  %2140 = vst [vmem:[#allocation2] sm:$0x1] %v2139_v58  ;;  %v1729_v8 = vshll.u32 %v1724_v2, 16  ;;  %v1734_v0 = vshll.u32 %v1725_v7, 16 }
 0x322   : > { %1723 = vst.msk [vmem:[#allocation3] sm:$0xff] %vm366_vm14, %v1724_v2  ;;  %v1774_v9 = vld [vmem:[#allocation2] sm:$0xfc]  ;;  %v1756_v10 = vrot.slane %v1754_v3, 1  ;;  %v1759_v11 = vrot.slane %v1757_v4, 2  ;;  %v1764_v13 = vrot.slane %v1762_v5, 1 }
 0x323   : > { %v1767_v14 = vrot.slane %v1765_v6, 2  ;;  %v1775_v15 = vld [vmem:[#allocation2 + $0x8] sm:$0x3]  ;;  %v1727_v16 = vshrl.u32 %v1724_v2, 16  ;;  %v1731_v17 = vrot.slane %v1729_v8, 1  ;;  %v1778_v32 = vrot.slane %v1774_v9, 2 }
 0x324   : > { %v1779_v18 = vrot.slane %v1775_v15, 2  ;;  %2168 = vst [vmem:[#allocation2 + $0x8] sm:$0x2] %v2167_v63  ;;  %v1743_v19 = vld [vmem:[#allocation2 + $0x8] sm:$0x1]  ;;  %v1760_v20 = vor.u32 %v1759_v11, %v1756_v10  ;;  %v1736_v25 = vrot.slane %v1734_v0, 1 }
 0x325   : > { %v1768_v21 = vor.u32 %v1767_v14, %v1764_v13  ;;  %v1747_v22 = vrot.slane %v1743_v19, 1  ;;  %v1742_v23 = vld [vmem:[#allocation2] sm:$0xfe]  ;;  %v1732_v24 = vor.u32 %v1731_v17, %v1727_v16  ;;  %vm2152_vm3 = vsmask.f32 7938 }
 0x326   : > { %v1780_v26 = vsel %vm4025_vm10, %v1778_v32, %v1779_v18  ;;  %v1746_v27 = vrot.slane %v1742_v23, 1  ;;  %v3119_v23 = vld [vmem:[%s3976_s7 + $0x40] sm:$0xff]  }
 0x327   : > { %v1769_v28 = vsel %vm400_vm11, %v1760_v20, %v1768_v21  ;;  %1782 = vst.msk [vmem:[#allocation3 + $0x10] sm:$0xff] %vm366_vm14, %v1780_v26  ;;  %v1737_v29 = vsel %vm370_vm13, %v1732_v24, %v1736_v25  ;;  %v1824_v30 = vld [vmem:[#allocation2 + $0x8] sm:$0xf8]  ;;  %v3120_v24 = vld [vmem:[%s3976_s7] sm:$0xff]   ;;  %2910 = vmatprep.subr.bf16.mxu1 %v3119_v23 }
 0x328   : > { %1770 = vrot.lane.b32.xlu0 %v1769_v28, %s3208_s22  ;;  %v1825_v31 = vld [vmem:[#allocation2 + $0x10] sm:$0xf]  ;;  %v1792_v33 = vld [vmem:[#allocation2 + $0x8] sm:$0xfc]  ;;  %v1748_v35 = vsel %vm4026_vm15, %v1746_v27, %v1747_v22  ;;  %1738 = vrot.lane.b32.xlu1 %v1737_v29, %s3208_s22  ;;  %v1827_v36 = vshrl.u32 %v1824_v30, 16  ;;  %v1830_v37 = vshll.u32 %v1824_v30, 16 }
 0x329   : > { %v1835_v39 = vshrl.u32 %v1825_v31, 16  ;;  %v1838_v40 = vshll.u32 %v1825_v31, 16  ;;  %v1793_v41 = vld [vmem:[#allocation2 + $0x10] sm:$0x7]  ;;  %1750 = vst.msk [vmem:[#allocation3 + $0x8] sm:$0xff] %vm366_vm14, %v1748_v35  ;;  %v1795_v42 = vshrl.u32 %v1792_v33, 16 }
 0x32a   : > { %v1798_v43 = vshll.u32 %v1792_v33, 16  ;;  %v1803_v44 = vshrl.u32 %v1793_v41, 16  ;;  %v1806_v45 = vshll.u32 %v1793_v41, 16  ;;  %v1847_v12 = vld [vmem:[#allocation2 + $0x8] sm:$0xf0]  ;;  %v1829_v46 = vrot.slane %v1827_v36, 3 }
 0x32b   : > { %v1832_v47 = vrot.slane %v1830_v37, 4  ;;  %v1837_v48 = vrot.slane %v1835_v39, 3  ;;  %v1840_v49 = vrot.slane %v1838_v40, 4  ;;  %v1848_v34 = vld [vmem:[#allocation2 + $0x10] sm:$0xf]  ;;  %v1797_v38 = vrot.slane %v1795_v42, 2 }
 0x32c   : > { %v1800_v50 = vrot.slane %v1798_v43, 3  ;;  %v1805_v51 = vrot.slane %v1803_v44, 2  ;;  %v1808_v52 = vrot.slane %v1806_v45, 3  ;;  %v1815_v54 = vld [vmem:[#allocation2 + $0x8] sm:$0xf8]  ;;  %v1851_v53 = vrot.slane %v1847_v12, 4 }
 0x32d   : > { %v1833_v55 = vor.u32 %v1832_v47, %v1829_v46  ;;  %v1841_v56 = vor.u32 %v1840_v49, %v1837_v48  ;;  %v1852_v57 = vrot.slane %v1848_v34, 4  ;;  %v1816_v58 = vld [vmem:[#allocation2 + $0x10] sm:$0x7]  ;;  %v1783_v59 = vld [vmem:[#allocation2 + $0x8] sm:$0xfc]  ;;  %v1819_v63 = vrot.slane %v1815_v54, 3 }
 0x32e   : > { %v1858_v60 = vld [vmem:[#allocation3 + $0x10] sm:$0xff]  ;;  %v1801_v61 = vor.u32 %v1800_v50, %v1797_v38  ;;  %v1809_v62 = vor.u32 %v1808_v52, %v1805_v51  ;;  %v1820_v2 = vrot.slane %v1816_v58, 3  ;;  %v1784_v3 = vld [vmem:[#allocation2 + $0x10] sm:$0x3]  ;;  %v1787_v6 = vrot.slane %v1783_v59, 2  ;;  %v3123_v27 = vld [vmem:[%s3976_s7 + $0x80] sm:$0xff]  }
 0x32f   : > { %2968 = vmatprep.mubr.msk.bf16.mxu0 %vm366_vm14, %v1858_v60  ;;  %v1842_v4 = vsel %vm468_vm0, %v1833_v55, %v1841_v56  ;;  %v1853_v5 = vsel %vm4027_vm1, %v1851_v53, %v1852_v57  ;;  %v1788_v7 = vrot.slane %v1784_v3, 2  ;;  %vm4030_vm0 = vcmask 1048064   ;;  %v3121_v25 = vld [vmem:[%s3976_s7 + $0x48] sm:$0xff]   ;;  %v3124_v28 = vld [vmem:[%s3976_s7 + $0x50] sm:$0xff]   ;;  %2972 = vmatprep.subr.bf16.mxu0 %v3123_v27  ;;  %v3127_v31 = vld [vmem:[%s3976_s7 + $0x58] sm:$0xff]  }
 0x330   : > { %1843 = vrot.lane.b32.xlu0 %v1842_v4, %s3208_s22  ;;  %v1810_v8 = vsel %vm4028_vm9, %v1801_v61, %v1809_v62  ;;  %1855 = vst.msk [vmem:[#allocation3 + $0x38] sm:$0xff] %vm366_vm14, %v1853_v5  ;;  %v1821_v0 = vsel %vm460_vm8, %v1819_v63, %v1820_v2  ;;  %vm4031_vm12 = vmmov %vm4030_vm0  ;;  %v3122_v26 = vld [vmem:[%s3976_s7 + $0x8] sm:$0xff]   ;;  %v3125_v29 = vld [vmem:[%s3976_s7 + $0x10] sm:$0xff]   ;;  %vm2179_vm15 = vcmask 1047553   ;;  %vm4034_vm1 = vcmask 1040384  }
 0x331   : > { %1811 = vrot.lane.b32.xlu1 %v1810_v8, %s3208_s22  ;;  %1823 = vst.msk [vmem:[#allocation3 + $0x30] sm:$0xff] %vm366_vm14, %v1821_v0  ;;  %v1789_v9 = vsel %vm4029_vm7, %v1787_v6, %v1788_v7  ;;  %vm4032_vm8 = vmmov %vm4030_vm0  ;;  %v3126_v30 = vld [vmem:[%s3976_s7 + $0x88] sm:$0xff]   ;;  %v3128_v33 = vld [vmem:[%s3976_s7 + $0x18] sm:$0xff]   ;;  %vm4035_vm7 = vsmask.f32 1280  ;;  %s3928_s22 = scalar_lea.sflag [#allocation5], %s326_s21 }
 0x332   : > { %1791 = vst.msk [vmem:[#allocation3 + $0x28] sm:$0xff] %vm366_vm14, %v1789_v9  ;;  %vm4033_vm5 = vmmov %vm4030_vm0  ;;  %v3129_v35 = vld [vmem:[%s3976_s7 + $0x90] sm:$0xff]   ;;  %v3130_v36 = vld [vmem:[%s3976_s7 + $0x60] sm:$0xff]  }
 0x333   : > { %v3131_v37 = vld [vmem:[%s3976_s7 + $0x20] sm:$0xff]   ;;  %v3132_v39 = vld [vmem:[%s3976_s7 + $0x98] sm:$0xff]   ;;  %v3133_v40 = vld [vmem:[%s3976_s7 + $0x68] sm:$0xff]  }
 0x334   : > { %v3134_v41 = vld [vmem:[%s3976_s7 + $0x28] sm:$0xff]   ;;  %v3135_v42 = vld [vmem:[%s3976_s7 + $0xa0] sm:$0xff]   ;;  %v3136_v43 = vld [vmem:[%s3976_s7 + $0x70] sm:$0xff]  }
 0x335   : > { %v3137_v44 = vld [vmem:[%s3976_s7 + $0x30] sm:$0xff]   ;;  %v3138_v45 = vld [vmem:[%s3976_s7 + $0xa8] sm:$0xff]   ;;  %v3139_v12 = vld [vmem:[%s3976_s7 + $0x78] sm:$0xff]  }
 0x336   : > { %v3140_v46 = vld [vmem:[%s3976_s7 + $0x38] sm:$0xff]   ;;  %v3141_v47 = vld [vmem:[%s3976_s7 + $0xb0] sm:$0xff]   ;;  %v2727_v34 = vld [vmem:[%s3975_s6] ss:$0 sm:$0xff] }
 0x337   : > { %v1861_v10 = vld [vmem:[#allocation3 + $0x38] sm:$0xff]  ;;  %v3142_v48 = vld [vmem:[%s3976_s7 + $0xb8] sm:$0xff]   ;;  %vm2160_vm9 = vmand %vm4034_vm1, %vm2152_vm3 }
 0x338   : > { %2969 = vmatmul.mubr.msk.bf16.vlgmr.msra.gmra.mrb[20].mxu0 %vm366_vm14, %v1861_v10  ;;  %vm2151_vm14 = vcmask 1047552  }
 0x339   : > { %2973 = vmatpush3.bf16.msra.mxu0 %v3123_v27  ;;  %vm2153_vm10 = vmand %vm2151_vm14, %vm2152_vm3 }
 0x33a   : > { %2974 = vmatprep.subr.bf16.mxu0 %v3126_v30 }
 0x33d   : > { %2975 = vmatpush3.bf16.msra.mxu0 %v3126_v30 }
 0x33e   : > { %2976 = vmatprep.subr.bf16.mxu0 %v3129_v35 }
 0x341   : > { %2977 = vmatpush3.bf16.msra.mxu0 %v3129_v35 }
 0x342   : > { %2978 = vmatprep.subr.bf16.mxu0 %v3132_v39 }
 0x345   : > { %2979 = vmatpush3.bf16.msra.mxu0 %v3132_v39 }
 0x346   : > { %2980 = vmatprep.subr.bf16.mxu0 %v3135_v42 }
 0x349   : > { %2981 = vmatpush3.bf16.msra.mxu0 %v3135_v42 }
 0x34a   : > { %2982 = vmatprep.subr.bf16.mxu0 %v3138_v45 }
 0x34d   : > { %2983 = vmatpush3.bf16.msra.mxu0 %v3138_v45 }
 0x34e   : > { %2984 = vmatprep.subr.bf16.mxu0 %v3141_v47 }
 0x351   : > { %2985 = vmatpush3.bf16.msra.mxu0 %v3141_v47 }
 0x352   : > { %2986 = vmatprep.subr.bf16.mxu0 %v3142_v48 }
 0x355   : > { %2987 = vmatpush3.bf16.msra.mxu0 %v3142_v48 }
 0x39a   : > { %v1771_v11 = vpop.permute.xlu0 %1770  ;;  %v1739_v13 = vpop.permute.xlu1 %1738 }
 0x39b   : > { %1773 = vst.msk [vmem:[#allocation3 + $0x8] sm:$0xff] %vm4030_vm0, %v1771_v11  ;;  %v2157_v11 = vld [vmem:[#allocation2 + $0x8] sm:$0x1]  ;;  %vm4036_vm0 = vcmask 1041408  }
 0x39c   : > { %1741 = vst.msk [vmem:[#allocation3] sm:$0xff] %vm4031_vm12, %v1739_v13  ;;  %vm2184_vm12 = vmand %vm4036_vm0, %vm4035_vm7 }
 0x3a2   : > { %v1844_v14 = vpop.permute.xlu0 %1843  ;;  %v1857_v15 = vld [vmem:[#allocation3 + $0x8] sm:$0xff] }
 0x3a3   : > { %1846 = vst.msk [vmem:[#allocation3 + $0x30] sm:$0xff] %vm4032_vm8, %v1844_v14  ;;  %v1812_v16 = vpop.permute.xlu1 %1811  ;;  %2067 = vmatprep.mubr.bf16.mxu1 %v1857_v15  ;;  %v1856_v17 = vld [vmem:[#allocation3] sm:$0xff]  ;;  %vm2188_vm8 = vmand %vm2164_vm2, %vm1110_vm4  ;;  %vm4039_vm2 = vcmask 1045504  }
 0x3a4   : > { %1814 = vst.msk [vmem:[#allocation3 + $0x28] sm:$0xff] %vm4033_vm5, %v1812_v16  ;;  %2068 = vmatmul.mubr.bf16.vlgmr.msra.gmra.mrb[16].mxu1 %v1856_v17  ;;  %v2154_v17 = vld [vmem:[#allocation2] sm:$0xff]  ;;  %vm4037_vm5 = vcmask 1046528  }
 0x3a5   : > { %2911 = vmatpush3.bf16.msra.mxu1 %v3120_v24 }
 0x3a6   : > { %2912 = vmatprep.subr.bf16.mxu1 %v3121_v25  ;;  %v2181_v25 = vld [vmem:[#allocation2 + $0x8] sm:$0xfe] }
 0x3a9   : > { %2913 = vmatpush3.bf16.msra.mxu1 %v3122_v26  ;;  %v2185_v26 = vld [vmem:[#allocation2 + $0x10] sm:$0x3] }
 0x3aa   : > { %v1860_v32 = vld [vmem:[#allocation3 + $0x30] sm:$0xff]  ;;  %2914 = vmatprep.subr.bf16.mxu1 %v3124_v28 }
 0x3ab   : > { %2075 = vmatprep.mubr.bf16.mxu1 %v1860_v32  ;;  %v1859_v18 = vld [vmem:[#allocation3 + $0x28] sm:$0xff] }
 0x3ac   : > { %2076 = vmatmul.mubr.bf16.gmra.mrb[20].mxu1 %v1859_v18 }
 0x3ad   : > { %2915 = vmatpush3.bf16.msra.mxu1 %v3125_v29 }
 0x3ae   : > { %2916 = vmatprep.subr.bf16.mxu1 %v3127_v31 }
 0x3b1   : > { %2917 = vmatpush3.bf16.msra.mxu1 %v3128_v33 }
 0x3b2   : > { %2918 = vmatprep.subr.bf16.mxu1 %v3130_v36 }
 0x3b5   : > { %2919 = vmatpush3.bf16.msra.mxu1 %v3131_v37 }
 0x3b6   : > { %2920 = vmatprep.subr.bf16.mxu1 %v3133_v40 }
 0x3b9   : > { %2921 = vmatpush3.bf16.msra.mxu1 %v3134_v41 }
 0x3ba   : > { %2922 = vmatprep.subr.bf16.mxu1 %v3136_v43 }
 0x3bd   : > { %2923 = vmatpush3.bf16.msra.mxu1 %v3137_v44 }
 0x3be   : > { %2924 = vmatprep.subr.bf16.mxu1 %v3139_v12 }
 0x3c1   : > { %2925 = vmatpush3.bf16.msra.mxu1 %v3140_v46 }
 0x40b   : > { %v3810_v19 = vpop.f32.mrb[20].mxu0 }
 0x40c   : > { %v3812_v20 = vpop.f32.mrb[21].mxu0 }
 0x40d   : > { %v3814_v21 = vpop.f32.mrb[22].mxu0 }
 0x40e   : > { %v3816_v22 = vpop.f32.mrb[23].mxu0 }
 0x477   : > { %v2892_v49 = vpop.f32.mrb[16].mxu1 }
 0x478   : > { %v2893_v38 = vpop.f32.mrb[17].mxu1 }
 0x479   : > { %v2894_v50 = vadd.f32 %v2893_v38, %v2892_v49  ;;  %v2895_v51 = vpop.f32.mrb[18].mxu1 }
 0x47a   : > { %v2896_v52 = vpop.f32.mrb[19].mxu1 }
 0x47b   : > { %v2070_v54 = vadd.f32 %v2894_v50, %v2727_v34  ;;  %v2897_v55 = vadd.f32 %v2896_v52, %v2895_v51 }
 0x47d   : > { %v2119_v56 = vadd.f32 %v3812_v20, %v2070_v54  ;;  %v2073_v53 = vadd.f32 %v2897_v55, %v2727_v34 }
 0x47f   : > { %v2122_v57 = vadd.f32 %v3816_v22, %v2073_v53  ;;  %v2898_v58 = vpop.f32.mrb[20].mxu1  ;;  %v2133_v60 = vmax.f32 %v2119_v56, 0.0 }
 0x480   : > { %v2899_v59 = vpop.f32.mrb[21].mxu1 }
 0x481   : > { %v2134_v61 = vmax.f32 %v2122_v57, 0.0  ;;  %v2900_v62 = vadd.f32 %v2899_v59, %v2898_v58  ;;  %v2901_v63 = vpop.f32.mrb[22].mxu1 }
 0x482   : > { %v2902_v2 = vpop.f32.mrb[23].mxu1 }
 0x483   : > { %v2141_v3 = vpack.c.bf16 %v2134_v61, %v2133_v60  ;;  %v2078_v4 = vadd.f32 %v2900_v62, %v2727_v34  ;;  %v2903_v5 = vadd.f32 %v2902_v2, %v2901_v63 }
 0x485   : > { %v2143_v6 = vshrl.u32 %v2141_v3, 16  ;;  %v2127_v7 = vadd.f32 %v3810_v19, %v2078_v4  ;;  %v2081_v8 = vadd.f32 %v2903_v5, %v2727_v34  ;;  %v2146_v9 = vshll.u32 %v2141_v3, 16 }
 0x487   : > { %v2145_v0 = vrot.slane %v2143_v6, 7  ;;  %v2130_v10 = vadd.f32 %v3814_v21, %v2081_v8  ;;  %v2135_v15 = vmax.f32 %v2127_v7, 0.0 }
 0x489   : > { %v2148_v13 = vor.u32 %v2146_v9, %v2145_v0  ;;  %v2158_v14 = vsel %vm3320_vm6, %v2145_v0, %v2157_v11  ;;  %v2136_v16 = vmax.f32 %v2130_v10, 0.0  ;;  %vm2180_vm6 = vmand %vm2179_vm15, %vm1110_vm4  ;;  %v2750_v10 = vld [vmem:[%s3977_s8] ss:$0 sm:$0xff] }
 0x48a   : > { %2159 = vst [vmem:[#allocation2 + $0x8] sm:$0x1] %v2158_v14  ;;  %vm4038_vm4 = vmmov %vm4037_vm5 }
 0x48b   : > { %v2155_v32 = vsel %vm2153_vm10, %v2148_v13, %v2154_v17  ;;  %v2169_v18 = vpack.c.bf16 %v2136_v16, %v2135_v15 }
 0x48c   : > { %2156 = vst [vmem:[#allocation2] sm:$0xff] %v2155_v32  ;;  %2193 = vst [vmem:[#allocation3] sm:$0xff] %v2155_v32  ;;  %v2199_v29 = vshll.u32 %v2155_v32, 16  ;;  %v2197_v40 = vshrl.u32 %v2155_v32, 16 }
 0x48d   : > { %v2171_v19 = vshrl.u32 %v2169_v18, 16  ;;  %v2174_v20 = vshll.u32 %v2169_v18, 16 }
 0x48e   : > { %v2201_v31 = vrot.slane %v2199_v29, 1 }
 0x48f   : > { %v2173_v21 = vrot.slane %v2171_v19, 6  ;;  %v2176_v1 = vrot.slane %v2174_v20, 7 }
 0x490   : > { %v2202_v45 = vor.u32 %v2201_v31, %v2197_v40 }
 0x491   : > { %v2161_v22 = vld [vmem:[#allocation2 + $0x8] sm:$0x1]  ;;  %v2177_v23 = vor.u32 %v2176_v1, %v2173_v21 }
 0x492   : > { %v2162_v24 = vsel %vm2160_vm9, 0, %v2161_v22 }
 0x493   : > { %2163 = vst [vmem:[#allocation2 + $0x8] sm:$0x1] %v2162_v24  ;;  %v2182_v27 = vsel %vm2180_vm6, %v2177_v23, %v2181_v25  ;;  %v2186_v28 = vsel %vm2184_vm12, %v2177_v23, %v2185_v26  ;;  %v2210_v30 = vld [vmem:[#allocation2] sm:$0xfe] }
 0x494   : > { %2187 = vst [vmem:[#allocation2 + $0x10] sm:$0x3] %v2186_v28  ;;  %2183 = vst [vmem:[#allocation2 + $0x8] sm:$0xfe] %v2182_v27  ;;  %v2214_v37 = vrot.slane %v2210_v30, 1 }
 0x49a   : > { %v2211_v33 = vld [vmem:[#allocation2 + $0x8] sm:$0x1] }
 0x49b   : > { %v2195_v35 = vld [vmem:[#allocation2 + $0x8] sm:$0x1]  ;;  %v2189_v36 = vld [vmem:[#allocation2 + $0x10] sm:$0x2]  ;;  %v2215_v39 = vrot.slane %v2211_v33, 1 }
 0x49c   : > { %v2204_v41 = vshll.u32 %v2195_v35, 16  ;;  %v2190_v42 = vsel %vm2188_vm8, 0, %v2189_v36  ;;  %v2219_v43 = vld [vmem:[#allocation2 + $0x8] sm:$0xfe]  ;;  %v2220_v47 = vld [vmem:[#allocation2 + $0x10] sm:$0x1] }
 0x49d   : > { %2191 = vst [vmem:[#allocation2 + $0x10] sm:$0x2] %v2190_v42  ;;  %v2216_v44 = vsel %vm4037_vm5, %v2214_v37, %v2215_v39  ;;  %v2228_v46 = vld [vmem:[#allocation2 + $0x8] sm:$0xfe]  ;;  %v2223_v48 = vrot.slane %v2219_v43, 1  ;;  %v2224_v49 = vrot.slane %v2220_v47, 1 }
 0x49e   : > { %v2206_v12 = vrot.slane %v2204_v41, 1  ;;  %2218 = vst [vmem:[#allocation3 + $0x10] sm:$0xff] %v2216_v44  ;;  %2988 = vmatprep.mubr.bf16.mxu0 %v2216_v44  ;;  %v2231_v38 = vshrl.u32 %v2228_v46, 16  ;;  %v2249_v51 = vld [vmem:[#allocation2 + $0x8] sm:$0xfc]  ;;  %v2234_v52 = vshll.u32 %v2228_v46, 16 }
 0x49f   : > { %v2225_v50 = vsel %vm4038_vm4, %v2223_v48, %v2224_v49  ;;  %v2253_v55 = vrot.slane %v2249_v51, 2 }
 0x4a0   : > { %v2207_v34 = vsel %vm370_vm13, %v2202_v45, %v2206_v12  ;;  %2227 = vst [vmem:[#allocation3 + $0x28] sm:$0xff] %v2225_v50  ;;  %v2233_v53 = vrot.slane %v2231_v38, 1  ;;  %v2236_v58 = vrot.slane %v2234_v52, 2 }
 0x4a1   : > { %2209 = vst [vmem:[#allocation3 + $0x8] sm:$0xff] %v2207_v34  ;;  %2495 = vmatprep.mubr.bf16.mxu1 %v2207_v34 }
 0x4a2   : > { %2496 = vmatmul.mubr.bf16.vlgmr.msra.gmra.mrb[24].mxu1 %v2155_v32  ;;  %v2237_v2 = vor.u32 %v2236_v58, %v2233_v53 }
 0x4a4   : > { %v2250_v54 = vld [vmem:[#allocation2 + $0x10] sm:$0x3] }
 0x4a5   : > { %v2229_v56 = vld [vmem:[#allocation2 + $0x10] sm:$0x3]  ;;  %v2254_v57 = vrot.slane %v2250_v54, 2 }
 0x4a6   : > { %v2239_v59 = vshrl.u32 %v2229_v56, 16  ;;  %v2242_v60 = vshll.u32 %v2229_v56, 16 }
 0x4a7   : > { %v2255_v61 = vsel %vm4039_vm2, %v2253_v55, %v2254_v57 }
 0x4a8   : > { %v2241_v62 = vrot.slane %v2239_v59, 1  ;;  %v2244_v63 = vrot.slane %v2242_v60, 2  ;;  %2257 = vst [vmem:[#allocation3 + $0x38] sm:$0xff] %v2255_v61  ;;  %2989 = vmatmul.mubr.bf16.vlgmr.msra.gmra.mrb[24].mxu0 %v2255_v61 }
 0x4aa   : > { %v2245_v3 = vor.u32 %v2244_v63, %v2241_v62 }
 0x4ac   : > { %v2246_v4 = vsel %vm400_vm11, %v2237_v2, %v2245_v3 }
 0x4ad   : > { %2248 = vst [vmem:[#allocation3 + $0x30] sm:$0xff] %v2246_v4  ;;  %2503 = vmatprep.mubr.bf16.mxu1 %v2246_v4 }
 0x4ae   : > { %2504 = vmatmul.mubr.bf16.gmra.mrb[28].mxu1 %v2225_v50 }
 0x575   : > { %v2926_v5 = vpop.f32.mrb[24].mxu1 }
 0x576   : > { %v2927_v6 = vpop.f32.mrb[25].mxu1 }
 0x577   : > { %v2928_v7 = vadd.f32 %v2927_v6, %v2926_v5  ;;  %v2929_v8 = vpop.f32.mrb[26].mxu1 }
 0x578   : > { %v2930_v0 = vpop.f32.mrb[27].mxu1 }
 0x579   : > { %v2931_v9 = vadd.f32 %v2930_v0, %v2929_v8  ;;  %v2498_v13 = vadd.f32 %v2928_v7, %v2750_v10 }
 0x57b   : > { %v2990_v11 = vpop.f32.mrb[24].mxu0  ;;  %v2501_v17 = vadd.f32 %v2931_v9, %v2750_v10 }
 0x57c   : > { %v2546_v14 = vpop.f32.mrb[25].mxu0 }
 0x57d   : > { %v2547_v15 = vadd.f32 %v2546_v14, %v2498_v13  ;;  %v2991_v16 = vpop.f32.mrb[26].mxu0 }
 0x57e   : > { %v2549_v32 = vpop.f32.mrb[27].mxu0 }
 0x57f   : > { %v2561_v18 = vmax.f32 %v2547_v15, 0.0  ;;  %v2550_v19 = vadd.f32 %v2549_v32, %v2501_v17 }
 0x581   : > { %v2932_v20 = vpop.f32.mrb[28].mxu1  ;;  %2565 = vst [vmem:[%s328_s26] sm:$0xff] %v2561_v18  ;;  %v2562_v21 = vmax.f32 %v2550_v19, 0.0 }
 0x582   : > { %v2933_v1 = vpop.f32.mrb[29].mxu1 }
 0x583   : > { %v2934_v22 = vadd.f32 %v2933_v1, %v2932_v20  ;;  %v2935_v23 = vpop.f32.mrb[30].mxu1  ;;  %2566 = vst [vmem:[%s328_s26 + $0x8] sm:$0xff] %v2562_v21 }
 0x584   : > { %v2936_v24 = vpop.f32.mrb[31].mxu1 }
 0x585   : > { %v2506_v25 = vadd.f32 %v2934_v22, %v2750_v10  ;;  %v2937_v26 = vadd.f32 %v2936_v24, %v2935_v23 }
 0x587   : > { %v2555_v27 = vadd.f32 %v2990_v11, %v2506_v25  ;;  %v2509_v28 = vadd.f32 %v2937_v26, %v2750_v10 }
 0x589   : > { %v2563_v29 = vmax.f32 %v2555_v27, 0.0  ;;  %v2558_v30 = vadd.f32 %v2991_v16, %v2509_v28 }
 0x58b   : > { %2775 = vst [vmem:[%s328_s26 + $0x10] sm:$0xff] %v2563_v29  ;;  %v2564_v31 = vmax.f32 %v2558_v30, 0.0 }
 0x58d   : > { %2776 = vst [vmem:[%s328_s26 + $0x18] sm:$0xff] %v2564_v31 }
 0x58e   : > { %3156 = shalt.err (!%p3153_p3)
}
 0x58f   : > { %s3157_s21 = scalar_lea.hbm %s3924_s16, 512  ;;  %s3161_s28 = scalar_lea.hbm %s3978_s9, 1024 }
 0x590   : > { %p3158_p4 = scmp.ne.s32.totalorder %s3924_s16, %s3157_s21  ;;  %p3162_p9 = scmp.lt.u32.totalorder %s3924_s16, %s3978_s9 }
 0x591   : > { %p3163_p10 = scmp.lt.u32.totalorder %s3161_s28, %s3157_s21  ;;  %p3165_p12 = scmp.lt.u32.totalorder %s3157_s21, %s3924_s16 }
 0x592   : > { %p3159_p7 = pnand %p3158_p4, %p3300_p5 }
 0x593   : > { %p3164_p11 = por %p3163_p10, %p3162_p9 }
 0x594   : > { %p3160_p8 = pneg %p3159_p7 }
 0x595   : > { %p3166_p13 = por %p3165_p12, %p3164_p11 }
 0x597   : > { %p3167_p0 = pnand %p3166_p13, %p3160_p8 }
 0x599   : > { %3170 = shalt.err (!%p3167_p0)
}
 0x59a   : > { %s3210_s17 = smov 128   ;;  %s3211_s13 = smov 8  }
 0x59b   : > { %2992 = dma.vmem_to_hbm [thread:$0]  (%p3300_p5), %s3919_s27, 512, %s3924_s16, %s3928_s22, %s3210_s17, %s3210_s17, %s3211_s13  }
 0x59c PF: > { %p2998_p1 = scmp.ge.s32.totalorder %s3205_s12, 2  ;;  %s2600_s23 = sand.u32 1, %s3193_s30  }
 0x59d   : > { %s2601_s24 = scalar_lea.sflag [#allocation5], %s2600_s23 }
 0x59e   : > { %p2995_p2 = pnand %p2998_p1, %p3304_p6 }
 0x5a0   : > { %3188 = dma.done.wait (!%p2995_p2), %s2601_s24, 512  }
 0x5a1   : > { %3190 = vsyncadd (!%p2995_p2), %s2601_s24, 4294966784  ;;  %p19_p3 = scmp.ge.s32.totalorder %s3287_s15, 4   ;;  %s4040_s30 = smov %s3197_s10 }
 0x5a2   : > { %s4041_s10 = smov %s3201_s11  ;;  %s4042_s11 = smov %s3298_s18 }
 0x5a3   : > { %s4043_s12 = smov %s3287_s15  ;;  %21 = sbr.rel (!%p19_p3) target bundleno = 3 (0x3), region = 93 }
 0x5aa   :  { %2606 = vsyncpa [#allocation5], 1 }
 0x5ab   :  { %2608 = vsyncpa [#allocation5 + $0x1], 1 }

</bundles_post_ra>
